<compile_context>
chip_gen: v7x
topology: tpu7x:2x2x1
jax: 0.10.0
libtpu: 0.0.40
codegen_flags: <defaults>
</compile_context>

<pallas_src>
import functools

import jax
import jax.numpy as jnp
from jax import lax
from jax.experimental import pallas as pl
from jax.experimental.pallas import tpu as pltpu


def _round_up(a, m):
    return (a + m - 1) // m * m


def _pick_batch_tile(batch, pref):
    """Batch tile (multiple of 8). Prefer >=2 grid steps so ("parallel",)
    actually shards across both TensorCores on v7x (no-op on v5e/v6e)."""
    bp = _round_up(batch, 8)
    tb = min(pref, bp)
    if bp >= 16 and bp // tb < 2:
        tb = _round_up(bp // 2, 8)
    return tb, _round_up(bp, tb)


# ----------------------------- Pallas kernels ------------------------------ #

def _conv_relu_pool_kernel(p_ref, w_ref, b_ref, o_ref, *, lane):
    """One batch tile: conv(as GEMM) + bias + ReLU + 2x2/2 max-pool.

    p_ref: (K, 4*lane) bf16  im2col patches^T; lane = Btile*PH*PW; the 4
                             pooling offsets are concatenated along the lane
                             dim (pool offset q is the outermost lane factor).
    w_ref: (Cout, K)   bf16  conv weights (OIHW flattened over Cin*KH*KW)
    b_ref: (Cout, 1)   f32
    o_ref: (Cout, lane) bf16 pooled output, lane order = (image-in-tile, ph*PW+pw)
    """
    # One long MXU push per grid step instead of 4 short ones.
    m = jnp.dot(w_ref[...], p_ref[...], preferred_element_type=jnp.float32)
    # Max over the 4 pooling-offset lane groups (static, per-group slices).
    y = jnp.maximum(jnp.maximum(m[:, 0 * lane:1 * lane], m[:, 1 * lane:2 * lane]),
                    jnp.maximum(m[:, 2 * lane:3 * lane], m[:, 3 * lane:4 * lane]))
    # bias-add / ReLU commute with the max; epilogue kept in f32 (v5e-friendly).
    o_ref[...] = jnp.maximum(y + b_ref[...], 0.0).astype(o_ref.dtype)


def _mlp_kernel(x_ref, w1_ref, b1_ref, w2_ref, b2_ref, w3_ref, b3_ref, o_ref):
    """Fused fc1+ReLU -> fc2+ReLU -> fc3 on one batch tile.

    Hidden activations never leave VMEM; all weight lane dims are padded to 128
    so every dot and the output store are lane-dense."""
    h = jnp.dot(x_ref[...], w1_ref[...], preferred_element_type=jnp.float32) + b1_ref[...]
    h = jnp.maximum(h, 0.0).astype(jnp.bfloat16)
    h = jnp.dot(h, w2_ref[...], preferred_element_type=jnp.float32) + b2_ref[...]
    h = jnp.maximum(h, 0.0).astype(jnp.bfloat16)
    y = jnp.dot(h, w3_ref[...], preferred_element_type=jnp.float32) + b3_ref[...]
    o_ref[...] = y.astype(o_ref.dtype)


# ------------------------------- glue --------------------------------------- #

def _pool_patches_tiled(x, kh, kw, tb):
    """x:(Bp,C,H,W) -> (Bp//tb, C*kh*kw, 4*tb*PH*PW) bf16 patches^T.

    Lane layout (outer->inner): [pool offset q=2*dy+dx][image-in-tile][ph*PW+pw]
      out[n, c*kh*kw + i*kw + j, ((q*tb + b)*PH + ph)*PW + pw]
        = x[n*tb + b, c, 2*ph + dy + i, 2*pw + dx + j]
    so the fused kernel computes relu(max_q(W @ patches_q) + bias) per tile.
    TODO(synk): fold this gather into the conv kernel (manual DMA windows) to
    remove the KH*KW activation duplication in HBM."""
    B, C, H, W = x.shape
    oh, ow = H - kh + 1, W - kw + 1
    ph, pw = oh // 2, ow // 2
    nb = B // tb
    xb = x.astype(jnp.bfloat16)
    cols = [xb[:, :, i:i + oh, j:j + ow] for i in range(kh) for j in range(kw)]
    p = jnp.stack(cols, axis=2)                               # (B, C, kh*kw, oh, ow)
    quads = [p[:, :, :, dy:dy + 2 * ph:2, dx:dx + 2 * pw:2]   # 4 x (B, C, kh*kw, ph, pw)
             for dy in range(2) for dx in range(2)]
    p = jnp.stack(quads, axis=1)                              # (B, 4, C, kh*kw, ph, pw)
    p = p.reshape(nb, tb, 4, C, kh * kw, ph, pw)
    p = p.transpose(0, 3, 4, 2, 1, 5, 6)                      # (nb, C, kh*kw, 4, tb, ph, pw)
    return p.reshape(nb, C * kh * kw, 4 * tb * ph * pw)


def conv_relu_pool(x, w, b, tb):
    """VALID 5x5 stride-1 conv + ReLU + 2x2/2 max-pool. NCHW in -> NCHW out (bf16)."""
    Bp, Cin, H, W = x.shape
    assert Bp % tb == 0
    Cout, Cin2, KH, KW = w.shape
    assert Cin == Cin2
    OH, OW = H - KH + 1, W - KW + 1
    PH, PW = OH // 2, OW // 2
    K, S = Cin * KH * KW, PH * PW
    lane = tb * S
    nb = Bp // tb

    patches = _pool_patches_tiled(x, KH, KW, tb)              # (nb, K, 4*lane) bf16
    wmat = w.reshape(Cout, K).astype(jnp.bfloat16)            # (Cout, K)
    brow = b.reshape(Cout, 1).astype(jnp.float32)             # (Cout, 1)

    out = pl.pallas_call(
        functools.partial(_conv_relu_pool_kernel, lane=lane),
        grid=(nb,),
        in_specs=[
            pl.BlockSpec((None, K, 4 * lane), lambda i: (i, 0, 0)),  # per-tile patches
            pl.BlockSpec((Cout, K), lambda i: (0, 0)),               # weights resident
            pl.BlockSpec((Cout, 1), lambda i: (0, 0)),               # bias resident
        ],
        out_specs=pl.BlockSpec((None, Cout, lane), lambda i: (i, 0, 0)),
        out_shape=jax.ShapeDtypeStruct((nb, Cout, lane), jnp.bfloat16),
        compiler_params=pltpu.CompilerParams(
            dimension_semantics=("parallel",),
            vmem_limit_bytes=32 * 1024 * 1024),
    )(patches, wmat, brow)

    # lane order inside a tile is (image-in-tile, ph, pw) -> back to NCHW.
    out = out.reshape(nb, Cout, tb, PH, PW).transpose(0, 2, 1, 3, 4)
    return out.reshape(Bp, Cout, PH, PW)


def _pad2(a, rows, cols, dtype):
    r, c = a.shape
    return jnp.pad(a.astype(dtype), ((0, rows - r), (0, cols - c)))


def mlp_head(x, params, tb_pref=128):
    """Fused fc1->fc2->fc3 head. x: (B, 400) -> (B, 128) f32 (cols >= 10 are
    exact zeros from the zero-padded weights; caller slices them off)."""
    B0, K = x.shape
    tb, Bp = _pick_batch_tile(B0, tb_pref)
    xb = x.astype(jnp.bfloat16)
    if Bp != B0:
        xb = jnp.pad(xb, ((0, Bp - B0), (0, 0)))

    H1 = _round_up(params["fc1_w"].shape[0], 128)   # 120 -> 128
    H2 = _round_up(params["fc2_w"].shape[0], 128)   # 84  -> 128
    NO = _round_up(params["fc3_w"].shape[0], 128)   # 10  -> 128
    w1 = _pad2(params["fc1_w"].T, K, H1, jnp.bfloat16)
    w2 = _pad2(params["fc2_w"].T, H1, H2, jnp.bfloat16)
    w3 = _pad2(params["fc3_w"].T, H2, NO, jnp.bfloat16)
    b1 = jnp.pad(params["fc1_b"], (0, H1 - params["fc1_b"].shape[0])).reshape(1, H1).astype(jnp.float32)
    b2 = jnp.pad(params["fc2_b"], (0, H2 - params["fc2_b"].shape[0])).reshape(1, H2).astype(jnp.float32)
    b3 = jnp.pad(params["fc3_b"], (0, NO - params["fc3_b"].shape[0])).reshape(1, NO).astype(jnp.float32)

    out = pl.pallas_call(
        _mlp_kernel,
        grid=(Bp // tb,),
        in_specs=[
            pl.BlockSpec((tb, K), lambda i: (i, 0)),
            pl.BlockSpec((K, H1), lambda i: (0, 0)),
            pl.BlockSpec((1, H1), lambda i: (0, 0)),
            pl.BlockSpec((H1, H2), lambda i: (0, 0)),
            pl.BlockSpec((1, H2), lambda i: (0, 0)),
            pl.BlockSpec((H2, NO), lambda i: (0, 0)),
            pl.BlockSpec((1, NO), lambda i: (0, 0)),
        ],
        out_specs=pl.BlockSpec((tb, NO), lambda i: (i, 0)),
        out_shape=jax.ShapeDtypeStruct((Bp, NO), jnp.float32),
        compiler_params=pltpu.CompilerParams(
            dimension_semantics=("parallel",),
            vmem_limit_bytes=32 * 1024 * 1024),
    )(xb, w1, b1, w2, b2, w3, b3)
    return out[:B0]


# ------------------------------ parameters --------------------------------- #

def init_params(key):
    ks = jax.random.split(key, 10)

    def u(k, shape, fan_in):
        bound = 1.0 / jnp.sqrt(jnp.float32(fan_in))
        return jax.random.uniform(k, shape, jnp.float32, -bound, bound)

    p = {}
    p["conv1_w"] = u(ks[0], (6, 3, 5, 5), 3 * 5 * 5)
    p["conv1_b"] = u(ks[1], (6,), 3 * 5 * 5)
    p["conv2_w"] = u(ks[2], (16, 6, 5, 5), 6 * 5 * 5)
    p["conv2_b"] = u(ks[3], (16,), 6 * 5 * 5)
    p["fc1_w"] = u(ks[4], (120, 16 * 5 * 5), 16 * 5 * 5)
    p["fc1_b"] = u(ks[5], (120,), 16 * 5 * 5)
    p["fc2_w"] = u(ks[6], (84, 120), 120)
    p["fc2_b"] = u(ks[7], (84,), 120)
    p["fc3_w"] = u(ks[8], (10, 84), 84)
    p["fc3_b"] = u(ks[9], (10,), 84)
    return p


# ------------------------------ forward pass -------------------------------- #

def net_forward(params, x):
    # x: (B, 3, 32, 32) NCHW float32
    B = x.shape[0]
    # Conv batch tile: 32 makes the conv1 output lane width 32*196 = 49*128.
    tb, Bp = _pick_batch_tile(B, pref=32)
    if Bp != B:
        x = jnp.pad(x, ((0, Bp - B), (0, 0), (0, 0), (0, 0)))
    x = conv_relu_pool(x, params["conv1_w"], params["conv1_b"], tb)   # (Bp, 6, 14, 14) bf16
    x = conv_relu_pool(x, params["conv2_w"], params["conv2_b"], tb)   # (Bp, 16, 5, 5)  bf16
    x = x.reshape(Bp, -1)                                             # (Bp, 400), PyTorch order
    logits = mlp_head(x, params)                                      # (Bp, 128) f32
    return logits[:B, :10]


# pure-JAX reference (sanity check). bf16_operands=True mimics the kernels'
# numerics (bf16 MXU operands / bf16 staged activations, f32 accumulation).
def net_forward_ref(params, x, bf16_operands=True):
    def q(v):
        return v.astype(jnp.bfloat16).astype(jnp.float32) if bf16_operands else v

    def conv(x, w, b):
        y = lax.conv_general_dilated(
            q(x), q(w), window_strides=(1, 1), padding="VALID",
            dimension_numbers=("NCHW", "OIHW", "NCHW"),
            precision=lax.Precision.HIGHEST)
        return jnp.maximum(y + b[None, :, None, None], 0.0)

    def pool(x):
        return lax.reduce_window(x, -jnp.inf, lax.max,
                                 (1, 1, 2, 2), (1, 1, 2, 2), "VALID")

    def fc(x, w, b):
        return jnp.dot(q(x), q(w.T), precision=lax.Precision.HIGHEST) + b

    x = pool(conv(x, params["conv1_w"], params["conv1_b"]))
    x = pool(conv(x, params["conv2_w"], params["conv2_b"]))
    x = x.reshape(x.shape[0], -1)
    x = jnp.maximum(fc(x, params["fc1_w"], params["fc1_b"]), 0.0)
    x = jnp.maximum(fc(x, params["fc2_w"], params["fc2_b"]), 0.0)
    return fc(x, params["fc3_w"], params["fc3_b"])


if __name__ == "__main__":
    key = jax.random.PRNGKey(0)
    kx, kp = jax.random.split(key)
    # Spatial size 32 is required by the module (fc1 expects 16*5*5 features).
    x = jax.random.normal(kx, (2, 3, 32, 32), jnp.float32)
    params = init_params(kp)

    fwd = jax.jit(net_forward)
    out = jax.block_until_ready(fwd(params, x))
    assert out.shape == (2, 10) and out.dtype == jnp.float32

    ref = jax.block_until_ready(net_forward_ref(params, x))
    assert jnp.allclose(out, ref, atol=2e-2, rtol=2e-2), float(jnp.max(jnp.abs(out - ref)))

    print("KERNEL_OK")
</pallas_src>

<mosaic_0001>
module attributes {stable_mosaic.version = 11 : i64} {
  func.func @_conv_relu_pool_kernel(%arg0: i32, %arg1: memref<1x75x6272xbf16, #tpu.memory_space<vmem>>, %arg2: memref<6x75xbf16, #tpu.memory_space<vmem>>, %arg3: memref<6x1xf32, #tpu.memory_space<vmem>>, %arg4: memref<1x6x1568xbf16, #tpu.memory_space<vmem>>) attributes {dimension_semantics = [#tpu.dimension_semantics<parallel>], iteration_bounds = array<i64: 1>, scalar_prefetch = 0 : i64, scratch_operands = 0 : i64, tpu.core_type = #tpu.core_type<tc>, window_params = [{transform_indices = @transform_0, window_bounds = array<i64: 1, 75, 6272>}, {pipeline_mode = #tpu.pipeline_mode<synchronous>, transform_indices = @transform_1, window_bounds = array<i64: 6, 75>}, {pipeline_mode = #tpu.pipeline_mode<synchronous>, transform_indices = @transform_2, window_bounds = array<i64: 6, 1>}, {transform_indices = @transform_3, window_bounds = array<i64: 1, 6, 1568>}]} {
    %c0 = arith.constant 0 : index
    %c0_0 = arith.constant 0 : index
    %0 = vector.load %arg2[%c0, %c0_0] : memref<6x75xbf16, #tpu.memory_space<vmem>>, vector<6x75xbf16>
    %c0_1 = arith.constant 0 : index
    %c0_2 = arith.constant 0 : index
    %c0_3 = arith.constant 0 : index
    %1 = vector.load %arg1[%c0_1, %c0_2, %c0_3] : memref<1x75x6272xbf16, #tpu.memory_space<vmem>>, vector<1x75x6272xbf16>
    %2 = vector.shape_cast %1 : vector<1x75x6272xbf16> to vector<75x6272xbf16>
    %cst = arith.constant dense<0.000000e+00> : vector<6x6272xf32>
    %3 = tpu.matmul %0, %2, %cst {dimension_numbers = #tpu.dot_dimension_numbers<[1], [0], [0], [1], [0, 0, 1, 1], [], []>} : vector<6x75xbf16>, vector<75x6272xbf16>, vector<6x6272xf32> -> vector<6x6272xf32>
    %4 = vector.extract_strided_slice %3 {offsets = [0, 0], sizes = [6, 1568], strides = [1, 1]} : vector<6x6272xf32> to vector<6x1568xf32>
    %5 = vector.extract_strided_slice %3 {offsets = [0, 1568], sizes = [6, 1568], strides = [1, 1]} : vector<6x6272xf32> to vector<6x1568xf32>
    %6 = arith.maximumf %4, %5 : vector<6x1568xf32>
    %7 = vector.extract_strided_slice %3 {offsets = [0, 3136], sizes = [6, 1568], strides = [1, 1]} : vector<6x6272xf32> to vector<6x1568xf32>
    %8 = vector.extract_strided_slice %3 {offsets = [0, 4704], sizes = [6, 1568], strides = [1, 1]} : vector<6x6272xf32> to vector<6x1568xf32>
    %9 = arith.maximumf %7, %8 : vector<6x1568xf32>
    %10 = arith.maximumf %6, %9 : vector<6x1568xf32>
    %c0_4 = arith.constant 0 : index
    %c0_5 = arith.constant 0 : index
    %11 = vector.load %arg3[%c0_4, %c0_5] : memref<6x1xf32, #tpu.memory_space<vmem>>, vector<6x1xf32>
    %12 = vector.broadcast %11 : vector<6x1xf32> to vector<6x1568xf32>
    %13 = arith.addf %10, %12 : vector<6x1568xf32>
    %cst_6 = arith.constant 0.000000e+00 : f32
    %14 = vector.broadcast %cst_6 : f32 to vector<6x1568xf32>
    %15 = arith.maximumf %13, %14 : vector<6x1568xf32>
    %16 = arith.truncf %15 : vector<6x1568xf32> to vector<6x1568xbf16>
    %c0_7 = arith.constant 0 : index
    %c0_8 = arith.constant 0 : index
    %c0_9 = arith.constant 0 : index
    %17 = vector.load %arg4[%c0_7, %c0_8, %c0_9] : memref<1x6x1568xbf16, #tpu.memory_space<vmem>>, vector<1x6x1568xbf16>
    %18 = vector.shape_cast %17 : vector<1x6x1568xbf16> to vector<6x1568xbf16>
    %19 = vector.shape_cast %16 : vector<6x1568xbf16> to vector<1x6x1568xbf16>
    tpu.vector_store %arg4[%c0_7, %c0_8, %c0_9], %19 {strides = array<i32>} : memref<1x6x1568xbf16, #tpu.memory_space<vmem>>, vector<1x6x1568xbf16>,
    return
  }
  func.func @transform_0(%arg0: i32) -> (i32, i32, i32) {
    %c0_i32 = arith.constant 0 : i32
    %c0_i32_0 = arith.constant 0 : i32
    %c0_i32_1 = arith.constant 0 : i32
    return %arg0, %c0_i32, %c0_i32_0 : i32, i32, i32
  }
  func.func @transform_1(%arg0: i32) -> (i32, i32) {
    %c0_i32 = arith.constant 0 : i32
    %c0_i32_0 = arith.constant 0 : i32
    %c0_i32_1 = arith.constant 0 : i32
    return %c0_i32, %c0_i32_0 : i32, i32
  }
  func.func @transform_2(%arg0: i32) -> (i32, i32) {
    %c0_i32 = arith.constant 0 : i32
    %c0_i32_0 = arith.constant 0 : i32
    %c0_i32_1 = arith.constant 0 : i32
    return %c0_i32, %c0_i32_0 : i32, i32
  }
  func.func @transform_3(%arg0: i32) -> (i32, i32, i32) {
    %c0_i32 = arith.constant 0 : i32
    %c0_i32_0 = arith.constant 0 : i32
    %c0_i32_1 = arith.constant 0 : i32
    return %arg0, %c0_i32, %c0_i32_0 : i32, i32, i32
  }
}

module attributes {stable_mosaic.version = 11 : i64} {
  func.func @_conv_relu_pool_kernel(%arg0: i32, %arg1: memref<1x150x800xbf16, #tpu.memory_space<vmem>>, %arg2: memref<16x150xbf16, #tpu.memory_space<vmem>>, %arg3: memref<16x1xf32, #tpu.memory_space<vmem>>, %arg4: memref<1x16x200xbf16, #tpu.memory_space<vmem>>) attributes {dimension_semantics = [#tpu.dimension_semantics<parallel>], iteration_bounds = array<i64: 1>, scalar_prefetch = 0 : i64, scratch_operands = 0 : i64, tpu.core_type = #tpu.core_type<tc>, window_params = [{transform_indices = @transform_0, window_bounds = array<i64: 1, 150, 800>}, {pipeline_mode = #tpu.pipeline_mode<synchronous>, transform_indices = @transform_1, window_bounds = array<i64: 16, 150>}, {pipeline_mode = #tpu.pipeline_mode<synchronous>, transform_indices = @transform_2, window_bounds = array<i64: 16, 1>}, {transform_indices = @transform_3, window_bounds = array<i64: 1, 16, 200>}]} {
    %c0 = arith.constant 0 : index
    %c0_0 = arith.constant 0 : index
    %0 = vector.load %arg2[%c0, %c0_0] : memref<16x150xbf16, #tpu.memory_space<vmem>>, vector<16x150xbf16>
    %c0_1 = arith.constant 0 : index
    %c0_2 = arith.constant 0 : index
    %c0_3 = arith.constant 0 : index
    %1 = vector.load %arg1[%c0_1, %c0_2, %c0_3] : memref<1x150x800xbf16, #tpu.memory_space<vmem>>, vector<1x150x800xbf16>
    %2 = vector.shape_cast %1 : vector<1x150x800xbf16> to vector<150x800xbf16>
    %cst = arith.constant dense<0.000000e+00> : vector<16x800xf32>
    %3 = tpu.matmul %0, %2, %cst {dimension_numbers = #tpu.dot_dimension_numbers<[1], [0], [0], [1], [0, 0, 1, 1], [], []>} : vector<16x150xbf16>, vector<150x800xbf16>, vector<16x800xf32> -> vector<16x800xf32>
    %4 = vector.extract_strided_slice %3 {offsets = [0, 0], sizes = [16, 200], strides = [1, 1]} : vector<16x800xf32> to vector<16x200xf32>
    %5 = vector.extract_strided_slice %3 {offsets = [0, 200], sizes = [16, 200], strides = [1, 1]} : vector<16x800xf32> to vector<16x200xf32>
    %6 = arith.maximumf %4, %5 : vector<16x200xf32>
    %7 = vector.extract_strided_slice %3 {offsets = [0, 400], sizes = [16, 200], strides = [1, 1]} : vector<16x800xf32> to vector<16x200xf32>
    %8 = vector.extract_strided_slice %3 {offsets = [0, 600], sizes = [16, 200], strides = [1, 1]} : vector<16x800xf32> to vector<16x200xf32>
    %9 = arith.maximumf %7, %8 : vector<16x200xf32>
    %10 = arith.maximumf %6, %9 : vector<16x200xf32>
    %c0_4 = arith.constant 0 : index
    %c0_5 = arith.constant 0 : index
    %11 = vector.load %arg3[%c0_4, %c0_5] : memref<16x1xf32, #tpu.memory_space<vmem>>, vector<16x1xf32>
    %12 = vector.broadcast %11 : vector<16x1xf32> to vector<16x200xf32>
    %13 = arith.addf %10, %12 : vector<16x200xf32>
    %cst_6 = arith.constant 0.000000e+00 : f32
    %14 = vector.broadcast %cst_6 : f32 to vector<16x200xf32>
    %15 = arith.maximumf %13, %14 : vector<16x200xf32>
    %16 = arith.truncf %15 : vector<16x200xf32> to vector<16x200xbf16>
    %c0_7 = arith.constant 0 : index
    %c0_8 = arith.constant 0 : index
    %c0_9 = arith.constant 0 : index
    %17 = vector.load %arg4[%c0_7, %c0_8, %c0_9] : memref<1x16x200xbf16, #tpu.memory_space<vmem>>, vector<1x16x200xbf16>
    %18 = vector.shape_cast %17 : vector<1x16x200xbf16> to vector<16x200xbf16>
    %19 = vector.shape_cast %16 : vector<16x200xbf16> to vector<1x16x200xbf16>
    tpu.vector_store %arg4[%c0_7, %c0_8, %c0_9], %19 {strides = array<i32>} : memref<1x16x200xbf16, #tpu.memory_space<vmem>>, vector<1x16x200xbf16>,
    return
  }
  func.func @transform_0(%arg0: i32) -> (i32, i32, i32) {
    %c0_i32 = arith.constant 0 : i32
    %c0_i32_0 = arith.constant 0 : i32
    %c0_i32_1 = arith.constant 0 : i32
    return %arg0, %c0_i32, %c0_i32_0 : i32, i32, i32
  }
  func.func @transform_1(%arg0: i32) -> (i32, i32) {
    %c0_i32 = arith.constant 0 : i32
    %c0_i32_0 = arith.constant 0 : i32
    %c0_i32_1 = arith.constant 0 : i32
    return %c0_i32, %c0_i32_0 : i32, i32
  }
  func.func @transform_2(%arg0: i32) -> (i32, i32) {
    %c0_i32 = arith.constant 0 : i32
    %c0_i32_0 = arith.constant 0 : i32
    %c0_i32_1 = arith.constant 0 : i32
    return %c0_i32, %c0_i32_0 : i32, i32
  }
  func.func @transform_3(%arg0: i32) -> (i32, i32, i32) {
    %c0_i32 = arith.constant 0 : i32
    %c0_i32_0 = arith.constant 0 : i32
    %c0_i32_1 = arith.constant 0 : i32
    return %arg0, %c0_i32, %c0_i32_0 : i32, i32, i32
  }
}

module attributes {stable_mosaic.version = 11 : i64} {
  func.func @_mlp_kernel(%arg0: i32, %arg1: memref<8x400xbf16, #tpu.memory_space<vmem>>, %arg2: memref<400x128xbf16, #tpu.memory_space<vmem>>, %arg3: memref<1x128xf32, #tpu.memory_space<vmem>>, %arg4: memref<128x128xbf16, #tpu.memory_space<vmem>>, %arg5: memref<1x128xf32, #tpu.memory_space<vmem>>, %arg6: memref<128x128xbf16, #tpu.memory_space<vmem>>, %arg7: memref<1x128xf32, #tpu.memory_space<vmem>>, %arg8: memref<8x128xf32, #tpu.memory_space<vmem>>) attributes {dimension_semantics = [#tpu.dimension_semantics<parallel>], iteration_bounds = array<i64: 1>, scalar_prefetch = 0 : i64, scratch_operands = 0 : i64, tpu.core_type = #tpu.core_type<tc>, window_params = [{transform_indices = @transform_0, window_bounds = array<i64: 8, 400>}, {pipeline_mode = #tpu.pipeline_mode<synchronous>, transform_indices = @transform_1, window_bounds = array<i64: 400, 128>}, {pipeline_mode = #tpu.pipeline_mode<synchronous>, transform_indices = @transform_2, window_bounds = array<i64: 1, 128>}, {pipeline_mode = #tpu.pipeline_mode<synchronous>, transform_indices = @transform_3, window_bounds = array<i64: 128, 128>}, {pipeline_mode = #tpu.pipeline_mode<synchronous>, transform_indices = @transform_4, window_bounds = array<i64: 1, 128>}, {pipeline_mode = #tpu.pipeline_mode<synchronous>, transform_indices = @transform_5, window_bounds = array<i64: 128, 128>}, {pipeline_mode = #tpu.pipeline_mode<synchronous>, transform_indices = @transform_6, window_bounds = array<i64: 1, 128>}, {transform_indices = @transform_7, window_bounds = array<i64: 8, 128>}]} {
    %c0 = arith.constant 0 : index
    %c0_0 = arith.constant 0 : index
    %0 = vector.load %arg1[%c0, %c0_0] : memref<8x400xbf16, #tpu.memory_space<vmem>>, vector<8x400xbf16>
    %c0_1 = arith.constant 0 : index
    %c0_2 = arith.constant 0 : index
    %1 = vector.load %arg2[%c0_1, %c0_2] : memref<400x128xbf16, #tpu.memory_space<vmem>>, vector<400x128xbf16>
    %cst = arith.constant dense<0.000000e+00> : vector<8x128xf32>
    %2 = tpu.matmul %0, %1, %cst {dimension_numbers = #tpu.dot_dimension_numbers<[1], [0], [0], [1], [0, 0, 1, 1], [], []>} : vector<8x400xbf16>, vector<400x128xbf16>, vector<8x128xf32> -> vector<8x128xf32>
    %c0_3 = arith.constant 0 : index
    %c0_4 = arith.constant 0 : index
    %3 = vector.load %arg3[%c0_3, %c0_4] : memref<1x128xf32, #tpu.memory_space<vmem>>, vector<1x128xf32>
    %4 = vector.broadcast %3 : vector<1x128xf32> to vector<8x128xf32>
    %5 = arith.addf %2, %4 : vector<8x128xf32>
    %cst_5 = arith.constant 0.000000e+00 : f32
    %6 = vector.broadcast %cst_5 : f32 to vector<8x128xf32>
    %7 = arith.maximumf %5, %6 : vector<8x128xf32>
    %8 = arith.truncf %7 : vector<8x128xf32> to vector<8x128xbf16>
    %c0_6 = arith.constant 0 : index
    %c0_7 = arith.constant 0 : index
    %9 = vector.load %arg4[%c0_6, %c0_7] : memref<128x128xbf16, #tpu.memory_space<vmem>>, vector<128x128xbf16>
    %cst_8 = arith.constant dense<0.000000e+00> : vector<8x128xf32>
    %10 = tpu.matmul %8, %9, %cst_8 {dimension_numbers = #tpu.dot_dimension_numbers<[1], [0], [0], [1], [0, 0, 1, 1], [], []>} : vector<8x128xbf16>, vector<128x128xbf16>, vector<8x128xf32> -> vector<8x128xf32>
    %c0_9 = arith.constant 0 : index
    %c0_10 = arith.constant 0 : index
    %11 = vector.load %arg5[%c0_9, %c0_10] : memref<1x128xf32, #tpu.memory_space<vmem>>, vector<1x128xf32>
    %12 = vector.broadcast %11 : vector<1x128xf32> to vector<8x128xf32>
    %13 = arith.addf %10, %12 : vector<8x128xf32>
    %cst_11 = arith.constant 0.000000e+00 : f32
    %14 = vector.broadcast %cst_11 : f32 to vector<8x128xf32>
    %15 = arith.maximumf %13, %14 : vector<8x128xf32>
    %16 = arith.truncf %15 : vector<8x128xf32> to vector<8x128xbf16>
    %c0_12 = arith.constant 0 : index
    %c0_13 = arith.constant 0 : index
    %17 = vector.load %arg6[%c0_12, %c0_13] : memref<128x128xbf16, #tpu.memory_space<vmem>>, vector<128x128xbf16>
    %cst_14 = arith.constant dense<0.000000e+00> : vector<8x128xf32>
    %18 = tpu.matmul %16, %17, %cst_14 {dimension_numbers = #tpu.dot_dimension_numbers<[1], [0], [0], [1], [0, 0, 1, 1], [], []>} : vector<8x128xbf16>, vector<128x128xbf16>, vector<8x128xf32> -> vector<8x128xf32>
    %c0_15 = arith.constant 0 : index
    %c0_16 = arith.constant 0 : index
    %19 = vector.load %arg7[%c0_15, %c0_16] : memref<1x128xf32, #tpu.memory_space<vmem>>, vector<1x128xf32>
    %20 = vector.broadcast %19 : vector<1x128xf32> to vector<8x128xf32>
    %21 = arith.addf %18, %20 : vector<8x128xf32>
    %c0_17 = arith.constant 0 : index
    %c0_18 = arith.constant 0 : index
    %22 = vector.load %arg8[%c0_17, %c0_18] : memref<8x128xf32, #tpu.memory_space<vmem>>, vector<8x128xf32>
    tpu.vector_store %arg8[%c0_17, %c0_18], %21 {strides = array<i32>} : memref<8x128xf32, #tpu.memory_space<vmem>>, vector<8x128xf32>,
    return
  }
  func.func @transform_0(%arg0: i32) -> (i32, i32) {
    %c0_i32 = arith.constant 0 : i32
    %c0_i32_0 = arith.constant 0 : i32
    return %arg0, %c0_i32 : i32, i32
  }
  func.func @transform_1(%arg0: i32) -> (i32, i32) {
    %c0_i32 = arith.constant 0 : i32
    %c0_i32_0 = arith.constant 0 : i32
    %c0_i32_1 = arith.constant 0 : i32
    return %c0_i32, %c0_i32_0 : i32, i32
  }
  func.func @transform_2(%arg0: i32) -> (i32, i32) {
    %c0_i32 = arith.constant 0 : i32
    %c0_i32_0 = arith.constant 0 : i32
    %c0_i32_1 = arith.constant 0 : i32
    return %c0_i32, %c0_i32_0 : i32, i32
  }
  func.func @transform_3(%arg0: i32) -> (i32, i32) {
    %c0_i32 = arith.constant 0 : i32
    %c0_i32_0 = arith.constant 0 : i32
    %c0_i32_1 = arith.constant 0 : i32
    return %c0_i32, %c0_i32_0 : i32, i32
  }
  func.func @transform_4(%arg0: i32) -> (i32, i32) {
    %c0_i32 = arith.constant 0 : i32
    %c0_i32_0 = arith.constant 0 : i32
    %c0_i32_1 = arith.constant 0 : i32
    return %c0_i32, %c0_i32_0 : i32, i32
  }
  func.func @transform_5(%arg0: i32) -> (i32, i32) {
    %c0_i32 = arith.constant 0 : i32
    %c0_i32_0 = arith.constant 0 : i32
    %c0_i32_1 = arith.constant 0 : i32
    return %c0_i32, %c0_i32_0 : i32, i32
  }
  func.func @transform_6(%arg0: i32) -> (i32, i32) {
    %c0_i32 = arith.constant 0 : i32
    %c0_i32_0 = arith.constant 0 : i32
    %c0_i32_1 = arith.constant 0 : i32
    return %c0_i32, %c0_i32_0 : i32, i32
  }
  func.func @transform_7(%arg0: i32) -> (i32, i32) {
    %c0_i32 = arith.constant 0 : i32
    %c0_i32_0 = arith.constant 0 : i32
    return %arg0, %c0_i32 : i32, i32
  }
}

</mosaic_0001>

<bundles_post_ra>
// kernel: net_forward.3
= control target key start
LH: loop header
LB: loop body
LE: loop exit
PB: predicated region body
PF: predicated region fallthrough
CT: control target
= control target key end

     0   :  { %v3634_v1 = vmov 0   ;;  %vm1451_vm0 = vcmask 1044480   ;;  %vm1452_vm1 = vcmask 1045504   ;;  %v3635_v10 = vmov 65535   ;;  %s4776_s0 = inlined_call_operand.vmem [shape: bf16[1,75,6272], index: 0, kind: input, shape index: {}]   ;;  %s4777_s1 = inlined_call_operand.vmem [shape: bf16[6,75], index: 1, kind: input, shape index: {}]   ;;  %s4778_s2 = inlined_call_operand.vmem [shape: f32[6,1], index: 2, kind: input, shape index: {}]   ;;  %s4779_s3 = inlined_call_operand.vmem [shape: bf16[1,6,1568], index: 3, kind: output, shape index: {}]  }
   0x1   :  { %v3268_v0 = vld [vmem:[%s4776_s0 + $0x4] ss:$196 sps:$4 sm:$0xff]   ;;  %1634 = vmatprep.mubr.bf16.mxu0 %v3634_v1  ;;  %1675 = vmatprep.mubr.bf16.mxu1 %v3634_v1  ;;  %v3270_v2 = vld [vmem:[%s4776_s0 + $0xc] ss:$196 sps:$4 sm:$0xff]   ;;  %v3276_v6 = vld [vmem:[%s4776_s0 + $0x194] ss:$196 sps:$4 sm:$0xff]  }
   0x2   :  { %3266 = vset.pattern.permute.xlu1 %v3634_v1  ;;  %3267 = vset.pattern.permute.xlu0 %v3634_v1  ;;  %v3272_v3 = vld [vmem:[%s4776_s0] ss:$196 sps:$4 sm:$0xff]   ;;  %v3273_v4 = vld [vmem:[%s4776_s0 + $0x8] ss:$196 sps:$4 sm:$0xff]   ;;  %v3279_v8 = vld [vmem:[%s4776_s0 + $0x190] ss:$196 sps:$4 sm:$0xff]  }
   0x3   :  { %1602 = vmatprep.subr.bf16.mxu0 %v3268_v0  ;;  %1643 = vmatprep.subr.bf16.mxu1 %v3270_v2  ;;  %v3274_v5 = vld [vmem:[%s4776_s0 + $0x18c] ss:$196 sps:$4 sm:$0xff]   ;;  %v3280_v9 = vld [vmem:[%s4776_s0 + $0x314] ss:$196 sps:$4 sm:$0xff]   ;;  %v1453_v11 = vsel %vm1451_vm0, 4294967295, %v3635_v10  ;;  %vm1447_vm2 = vcmask 613376  }
   0x4   :  { %1603 = vmatpush1.bf16.msra.mxu0 %v3272_v3  ;;  %1644 = vmatpush1.bf16.msra.mxu1 %v3273_v4  ;;  %v3278_v7 = vld [vmem:[%s4776_s0 + $0x188] ss:$196 sps:$4 sm:$0xff]   ;;  %v3282_v12 = vld [vmem:[%s4776_s0 + $0x31c] ss:$196 sps:$4 sm:$0xff]   ;;  %v3284_v13 = vld [vmem:[%s4776_s0 + $0x310] ss:$196 sps:$4 sm:$0xff]  }
   0x5   :  { %1604 = vmatprep.subr.bf16.mxu0 %v3274_v5  ;;  %1645 = vmatprep.subr.bf16.mxu1 %v3276_v6  ;;  %v3285_v14 = vld [vmem:[%s4776_s0 + $0x318] ss:$196 sps:$4 sm:$0xff]   ;;  %v3288_v16 = vld [vmem:[%s4776_s0 + $0x4a4] ss:$196 sps:$4 sm:$0xff]   ;;  %v3712_v19 = vsel %vm1452_vm1, %v1453_v11, 0  ;;  %vm3637_vm3 = vmmov 0  }
   0x6   :  { %v3286_v15 = vld [vmem:[%s4776_s0 + $0x49c] ss:$196 sps:$4 sm:$0xff]   ;;  %v3292_v20 = vld [vmem:[%s4776_s0 + $0x624] ss:$196 sps:$4 sm:$0x3f]   ;;  %vm2665_vm4 = vcmask 785408  }
   0x7   :  { %v3290_v17 = vld [vmem:[%s4776_s0 + $0x498] ss:$196 sps:$4 sm:$0xff]   ;;  %v3291_v18 = vld [vmem:[%s4776_s0 + $0x4a0] ss:$196 sps:$4 sm:$0xff]   ;;  %v1459_v22 = vand.u32 %v3292_v20, %v3712_v19  ;;  %v3298_v31 = vld [vmem:[%s4776_s0 + $0x10] ss:$196 sps:$4 sm:$0xff]  }
   0x8   :  { %1605 = vmatpush1.bf16.msra.mxu0 %v3278_v7  ;;  %1646 = vmatpush1.bf16.msra.mxu1 %v3279_v8  ;;  %v3294_v21 = vld [vmem:[%s4776_s0 + $0x62c] ss:$196 sps:$4 sm:$0x3f]   ;;  %v3296_v23 = vld [vmem:[%s4776_s0 + $0x620] ss:$196 sps:$4 sm:$0x3f]  }
   0x9   :  { %1606 = vmatprep.subr.bf16.mxu0 %v3280_v9  ;;  %1647 = vmatprep.subr.bf16.mxu1 %v3282_v12  ;;  %v3297_v24 = vld [vmem:[%s4776_s0 + $0x628] ss:$196 sps:$4 sm:$0x3f]   ;;  %v1465_v25 = vand.u32 %v3294_v21, %v3712_v19  ;;  %v1456_v26 = vand.u32 %v3296_v23, %v3712_v19  ;;  %v3300_v28 = vld [vmem:[%s4776_s0 + $0x14] ss:$196 sps:$4 sm:$0xff]   ;;  %vm2820_vm5 = vcmask 523264  }
   0xa   :  { %v1462_v27 = vand.u32 %v3297_v24, %v3712_v19  ;;  %v3303_v29 = vld [vmem:[%s4776_s0 + $0x1c] ss:$196 sps:$4 sm:$0xff]   ;;  %v3309_v34 = vld [vmem:[%s4776_s0 + $0x1a4] ss:$196 sps:$4 sm:$0xff]   ;;  %v3315_v38 = vld [vmem:[%s4776_s0 + $0x32c] ss:$196 sps:$4 sm:$0xff]  }
   0xb   :  { %v3739_v30 = vld [vmem:[%s4777_s1] sm:$0x7]  ;;  %v3301_v32 = vld [vmem:[%s4776_s0 + $0x18] ss:$196 sps:$4 sm:$0xff]   ;;  %v3312_v37 = vld [vmem:[%s4776_s0 + $0x324] ss:$196 sps:$4 sm:$0xff]  }
   0xc   :  { %1607 = vmatpush1.bf16.msra.mxu0 %v3284_v13  ;;  %1648 = vmatpush1.bf16.msra.mxu1 %v3285_v14  ;;  %v3306_v33 = vld [vmem:[%s4776_s0 + $0x19c] ss:$196 sps:$4 sm:$0xff]   ;;  %v3313_v40 = vld [vmem:[%s4776_s0 + $0x328] ss:$196 sps:$4 sm:$0xff]   ;;  %v3321_v42 = vld [vmem:[%s4776_s0 + $0x4b4] ss:$196 sps:$4 sm:$0xff]  }
   0xd   :  { %1608 = vmatprep.subr.bf16.mxu0 %v3286_v15  ;;  %1649 = vmatprep.subr.bf16.mxu1 %v3288_v16  ;;  %v3304_v35 = vld [vmem:[%s4776_s0 + $0x198] ss:$196 sps:$4 sm:$0xff]   ;;  %v3307_v36 = vld [vmem:[%s4776_s0 + $0x1a0] ss:$196 sps:$4 sm:$0xff]   ;;  %v3318_v41 = vld [vmem:[%s4776_s0 + $0x4ac] ss:$196 sps:$4 sm:$0xff]  }
   0xe   :  { %v3310_v39 = vld [vmem:[%s4776_s0 + $0x320] ss:$196 sps:$4 sm:$0xff]   ;;  %v3324_v43 = vld [vmem:[%s4776_s0 + $0x634] ss:$196 sps:$4 sm:$0x3f]   ;;  %vm2950_vm6 = vcmask 256000  }
   0xf   :  { %v3327_v44 = vld [vmem:[%s4776_s0 + $0x63c] ss:$196 sps:$4 sm:$0x3f]   ;;  %v3316_v45 = vld [vmem:[%s4776_s0 + $0x4a8] ss:$196 sps:$4 sm:$0xff]   ;;  %v1471_v49 = vand.u32 %v3324_v43, %v3712_v19 }
  0x10   :  { %1609 = vmatpush1.bf16.msra.mxu0 %v3290_v17  ;;  %1650 = vmatpush1.bf16.msra.mxu1 %v3291_v18  ;;  %v3322_v46 = vld [vmem:[%s4776_s0 + $0x630] ss:$196 sps:$4 sm:$0x3f]   ;;  %v3325_v48 = vld [vmem:[%s4776_s0 + $0x638] ss:$196 sps:$4 sm:$0x3f]   ;;  %v1477_v50 = vand.u32 %v3327_v44, %v3712_v19 }
  0x11   :  { %1610 = vmatprep.subr.bf16.mxu0 %v1459_v22  ;;  %1651 = vmatprep.subr.bf16.mxu1 %v1465_v25  ;;  %v3319_v47 = vld [vmem:[%s4776_s0 + $0x4b0] ss:$196 sps:$4 sm:$0xff]   ;;  %v1468_v51 = vand.u32 %v3322_v46, %v3712_v19  ;;  %v1474_v52 = vand.u32 %v3325_v48, %v3712_v19  ;;  %v3330_v53 = vld [vmem:[%s4776_s0 + $0x24] ss:$196 sps:$4 sm:$0xff]   ;;  %v3345_v62 = vld [vmem:[%s4776_s0 + $0x33c] ss:$196 sps:$4 sm:$0xff]  }
  0x12   :  { %v3333_v54 = vld [vmem:[%s4776_s0 + $0x2c] ss:$196 sps:$4 sm:$0xff]   ;;  %v3328_v55 = vld [vmem:[%s4776_s0 + $0x20] ss:$196 sps:$4 sm:$0xff]   ;;  %v3339_v58 = vld [vmem:[%s4776_s0 + $0x1b4] ss:$196 sps:$4 sm:$0xff]  }
  0x13   :  { %v3331_v56 = vld [vmem:[%s4776_s0 + $0x28] ss:$196 sps:$4 sm:$0xff]   ;;  %v3337_v60 = vld [vmem:[%s4776_s0 + $0x1b0] ss:$196 sps:$4 sm:$0xff]   ;;  %v3343_v0 = vld [vmem:[%s4776_s0 + $0x338] ss:$196 sps:$4 sm:$0xff]  }
  0x14   :  { %1611 = vmatpush1.bf16.msra.mxu0 %v1456_v26  ;;  %1652 = vmatpush1.bf16.msra.mxu1 %v1462_v27  ;;  %v3336_v57 = vld [vmem:[%s4776_s0 + $0x1ac] ss:$196 sps:$4 sm:$0xff]   ;;  %v3342_v61 = vld [vmem:[%s4776_s0 + $0x334] ss:$196 sps:$4 sm:$0xff]   ;;  %v3348_v2 = vld [vmem:[%s4776_s0 + $0x4bc] ss:$196 sps:$4 sm:$0xff]  }
  0x15   :  { %1684 = vmatprep.subr.bf16.mxu0 %v3300_v28  ;;  %1725 = vmatprep.subr.bf16.mxu1 %v3303_v29  ;;  %v3334_v59 = vld [vmem:[%s4776_s0 + $0x1a8] ss:$196 sps:$4 sm:$0xff]   ;;  %v3340_v63 = vld [vmem:[%s4776_s0 + $0x330] ss:$196 sps:$4 sm:$0xff]   ;;  %v3346_v6 = vld [vmem:[%s4776_s0 + $0x4b8] ss:$196 sps:$4 sm:$0xff]  }
  0x16   :  { %v3351_v3 = vld [vmem:[%s4776_s0 + $0x4c4] ss:$196 sps:$4 sm:$0xff]   ;;  %v3357_v5 = vld [vmem:[%s4776_s0 + $0x64c] ss:$196 sps:$4 sm:$0x3f]  }
  0x17   :  { %3201 = vmatmul.mubr.msk.bf16.vlgmr.msra.gmra.mrb[0].mxu0 %vm1447_vm2, %v3739_v30  ;;  %3202 = vmatmul.mubr.msk.bf16.vlgmr.msra.gmra.mrb[0].mxu1 %vm1447_vm2, %v3739_v30  ;;  %v3354_v4 = vld [vmem:[%s4776_s0 + $0x644] ss:$196 sps:$4 sm:$0x3f]   ;;  %v1489_v11 = vand.u32 %v3357_v5, %v3712_v19  ;;  %v3360_v14 = vld [vmem:[%s4776_s0 + $0x34] ss:$196 sps:$4 sm:$0xff]  }
  0x18   :  { %1685 = vmatpush1.bf16.msra.mxu0 %v3298_v31  ;;  %1726 = vmatpush1.bf16.msra.mxu1 %v3301_v32  ;;  %v3349_v7 = vld [vmem:[%s4776_s0 + $0x4c0] ss:$196 sps:$4 sm:$0xff]   ;;  %v3355_v9 = vld [vmem:[%s4776_s0 + $0x648] ss:$196 sps:$4 sm:$0x3f]   ;;  %v1483_v10 = vand.u32 %v3354_v4, %v3712_v19 }
  0x19   :  { %1686 = vmatprep.subr.bf16.mxu0 %v3306_v33  ;;  %1727 = vmatprep.subr.bf16.mxu1 %v3309_v34  ;;  %v3352_v8 = vld [vmem:[%s4776_s0 + $0x640] ss:$196 sps:$4 sm:$0x3f]   ;;  %v1486_v13 = vand.u32 %v3355_v9, %v3712_v19  ;;  %v3358_v16 = vld [vmem:[%s4776_s0 + $0x30] ss:$196 sps:$4 sm:$0xff]  }
  0x1a   :  { %1716 = vmatprep.mubr.bf16.mxu0 %v3634_v1  ;;  %1757 = vmatprep.mubr.bf16.mxu1 %v3634_v1  ;;  %v1480_v12 = vand.u32 %v3352_v8, %v3712_v19  ;;  %v3363_v15 = vld [vmem:[%s4776_s0 + $0x3c] ss:$196 sps:$4 sm:$0xff]   ;;  %v3369_v20 = vld [vmem:[%s4776_s0 + $0x1c4] ss:$196 sps:$4 sm:$0xff]   ;;  %v3375_v24 = vld [vmem:[%s4776_s0 + $0x34c] ss:$196 sps:$4 sm:$0xff]  }
  0x1b   :  { %v3361_v17 = vld [vmem:[%s4776_s0 + $0x38] ss:$196 sps:$4 sm:$0xff]   ;;  %v3367_v22 = vld [vmem:[%s4776_s0 + $0x1c0] ss:$196 sps:$4 sm:$0xff]   ;;  %v3373_v26 = vld [vmem:[%s4776_s0 + $0x348] ss:$196 sps:$4 sm:$0xff]  }
  0x1c   :  { %1687 = vmatpush1.bf16.msra.mxu0 %v3304_v35  ;;  %1728 = vmatpush1.bf16.msra.mxu1 %v3307_v36  ;;  %v3366_v18 = vld [vmem:[%s4776_s0 + $0x1bc] ss:$196 sps:$4 sm:$0xff]   ;;  %v3372_v23 = vld [vmem:[%s4776_s0 + $0x344] ss:$196 sps:$4 sm:$0xff]   ;;  %v3378_v27 = vld [vmem:[%s4776_s0 + $0x4cc] ss:$196 sps:$4 sm:$0xff]  }
  0x1d   :  { %1688 = vmatprep.subr.bf16.mxu0 %v3312_v37  ;;  %1729 = vmatprep.subr.bf16.mxu1 %v3315_v38  ;;  %v3364_v21 = vld [vmem:[%s4776_s0 + $0x1b8] ss:$196 sps:$4 sm:$0xff]   ;;  %v3370_v25 = vld [vmem:[%s4776_s0 + $0x340] ss:$196 sps:$4 sm:$0xff]   ;;  %v3376_v32 = vld [vmem:[%s4776_s0 + $0x4c8] ss:$196 sps:$4 sm:$0xff]  }
  0x1e   :  { %v3384_v28 = vld [vmem:[%s4776_s0 + $0x654] ss:$196 sps:$4 sm:$0x3f]   ;;  %v3387_v31 = vld [vmem:[%s4776_s0 + $0x65c] ss:$196 sps:$4 sm:$0x3f]  }
  0x1f   :  { %v3381_v29 = vld [vmem:[%s4776_s0 + $0x4d4] ss:$196 sps:$4 sm:$0xff]   ;;  %v1495_v36 = vand.u32 %v3384_v28, %v3712_v19  ;;  %v1501_v37 = vand.u32 %v3387_v31, %v3712_v19  ;;  %v3391_v43 = vld [vmem:[%s4776_s0 + $0x48] ss:$196 sps:$4 sm:$0xff]   ;;  %v3426_v5 = vld [vmem:[%s4776_s0 + $0x1dc] ss:$196 sps:$4 sm:$0xff]  }
  0x20   :  { %1689 = vmatpush1.bf16.msra.mxu0 %v3310_v39  ;;  %1730 = vmatpush1.bf16.msra.mxu1 %v3313_v40  ;;  %v3382_v33 = vld [vmem:[%s4776_s0 + $0x650] ss:$196 sps:$4 sm:$0x3f]   ;;  %v3385_v35 = vld [vmem:[%s4776_s0 + $0x658] ss:$196 sps:$4 sm:$0x3f]  }
  0x21   :  { %1690 = vmatprep.subr.bf16.mxu0 %v3318_v41  ;;  %1731 = vmatprep.subr.bf16.mxu1 %v3321_v42  ;;  %v3379_v34 = vld [vmem:[%s4776_s0 + $0x4d0] ss:$196 sps:$4 sm:$0xff]   ;;  %v1492_v38 = vand.u32 %v3382_v33, %v3712_v19  ;;  %v1498_v39 = vand.u32 %v3385_v35, %v3712_v19  ;;  %v3390_v40 = vld [vmem:[%s4776_s0 + $0x44] ss:$196 sps:$4 sm:$0xff]   ;;  %v3421_v4 = vld [vmem:[%s4776_s0 + $0x58] ss:$196 sps:$4 sm:$0xff]  }
  0x22   :  { %v3393_v41 = vld [vmem:[%s4776_s0 + $0x4c] ss:$196 sps:$4 sm:$0xff]   ;;  %v3388_v42 = vld [vmem:[%s4776_s0 + $0x40] ss:$196 sps:$4 sm:$0xff]   ;;  %v3402_v48 = vld [vmem:[%s4776_s0 + $0x354] ss:$196 sps:$4 sm:$0xff]  }
  0x23   :  { %v3396_v44 = vld [vmem:[%s4776_s0 + $0x1cc] ss:$196 sps:$4 sm:$0xff]   ;;  %v3427_v8 = vld [vmem:[%s4776_s0 + $0x1e0] ss:$196 sps:$4 sm:$0xff]   ;;  %v3462_v35 = vld [vmem:[%s4776_s0 + $0x374] ss:$196 sps:$4 sm:$0xff]  }
  0x24   :  { %1691 = vmatpush1.bf16.msra.mxu0 %v3316_v45  ;;  %1732 = vmatpush1.bf16.msra.mxu1 %v3319_v47  ;;  %v3399_v45 = vld [vmem:[%s4776_s0 + $0x1d4] ss:$196 sps:$4 sm:$0xff]   ;;  %v3394_v46 = vld [vmem:[%s4776_s0 + $0x1c8] ss:$196 sps:$4 sm:$0xff]   ;;  %v3448_v28 = vld [vmem:[%s4776_s0 + $0x60] ss:$196 sps:$4 sm:$0xff]  }
  0x25   :  { %1692 = vmatprep.subr.bf16.mxu0 %v1471_v49  ;;  %1733 = vmatprep.subr.bf16.mxu1 %v1477_v50  ;;  %v3397_v47 = vld [vmem:[%s4776_s0 + $0x1d0] ss:$196 sps:$4 sm:$0xff]   ;;  %v3405_v49 = vld [vmem:[%s4776_s0 + $0x35c] ss:$196 sps:$4 sm:$0xff]   ;;  %v3432_v9 = vld [vmem:[%s4776_s0 + $0x364] ss:$196 sps:$4 sm:$0xff]  }
  0x26   :  { %v3400_v50 = vld [vmem:[%s4776_s0 + $0x350] ss:$196 sps:$4 sm:$0xff]   ;;  %v3454_v33 = vld [vmem:[%s4776_s0 + $0x1e8] ss:$196 sps:$4 sm:$0xff]  }
  0x27   :  { %v3456_v31 = vld [vmem:[%s4776_s0 + $0x1ec] ss:$196 sps:$4 sm:$0xff]  }
  0x28   :  { %1693 = vmatpush1.bf16.msra.mxu0 %v1468_v51  ;;  %1734 = vmatpush1.bf16.msra.mxu1 %v1474_v52  ;;  %v3403_v51 = vld [vmem:[%s4776_s0 + $0x358] ss:$196 sps:$4 sm:$0xff]  }
  0x29   :  { %1766 = vmatprep.subr.bf16.mxu0 %v3330_v53  ;;  %1807 = vmatprep.subr.bf16.mxu1 %v3333_v54  ;;  %v3408_v52 = vld [vmem:[%s4776_s0 + $0x4dc] ss:$196 sps:$4 sm:$0xff]   ;;  %v3411_v53 = vld [vmem:[%s4776_s0 + $0x4e4] ss:$196 sps:$4 sm:$0xff]  }
  0x2a   :  { %v3414_v54 = vld [vmem:[%s4776_s0 + $0x664] ss:$196 sps:$4 sm:$0x3f]  }
  0x2b   :  { %3203 = vmatmul.mubr.msk.bf16.vlgmr.msra.gmra.mrb[4].mxu0 %vm1447_vm2, %v3739_v30  ;;  %3204 = vmatmul.mubr.msk.bf16.vlgmr.msra.gmra.mrb[4].mxu1 %vm1447_vm2, %v3739_v30 }
  0x2c   :  { %1767 = vmatpush1.bf16.msra.mxu0 %v3328_v55  ;;  %1808 = vmatpush1.bf16.msra.mxu1 %v3331_v56  ;;  %v3417_v55 = vld [vmem:[%s4776_s0 + $0x66c] ss:$196 sps:$4 sm:$0x3f]   ;;  %v3406_v56 = vld [vmem:[%s4776_s0 + $0x4d8] ss:$196 sps:$4 sm:$0xff]  }
  0x2d   :  { %1768 = vmatprep.subr.bf16.mxu0 %v3336_v57  ;;  %1809 = vmatprep.subr.bf16.mxu1 %v3339_v58  ;;  %v3412_v57 = vld [vmem:[%s4776_s0 + $0x660] ss:$196 sps:$4 sm:$0x3f]  }
  0x2e   :  { %1798 = vmatprep.mubr.bf16.mxu0 %v3634_v1  ;;  %1839 = vmatprep.mubr.bf16.mxu1 %v3634_v1  ;;  %v3409_v58 = vld [vmem:[%s4776_s0 + $0x4e0] ss:$196 sps:$4 sm:$0xff]  }
  0x30   :  { %1769 = vmatpush1.bf16.msra.mxu0 %v3334_v59  ;;  %1810 = vmatpush1.bf16.msra.mxu1 %v3337_v60  ;;  %v3415_v59 = vld [vmem:[%s4776_s0 + $0x668] ss:$196 sps:$4 sm:$0x3f]   ;;  %v1507_v60 = vand.u32 %v3414_v54, %v3712_v19  ;;  %v3481_v54 = vld [vmem:[%s4776_s0 + $0x78] ss:$196 sps:$4 sm:$0xff]  }
  0x31   :  { %1770 = vmatprep.subr.bf16.mxu0 %v3342_v61  ;;  %1811 = vmatprep.subr.bf16.mxu1 %v3345_v62  ;;  %v1513_v61 = vand.u32 %v3417_v55, %v3712_v19  ;;  %v1504_v62 = vand.u32 %v3412_v57, %v3712_v19  ;;  %v3486_v55 = vld [vmem:[%s4776_s0 + $0x1fc] ss:$196 sps:$4 sm:$0xff]  }
  0x32   :  { %v3484_v57 = vld [vmem:[%s4776_s0 + $0x1f8] ss:$196 sps:$4 sm:$0xff]  }
  0x34   :  { %1771 = vmatpush1.bf16.msra.mxu0 %v3340_v63  ;;  %1812 = vmatpush1.bf16.msra.mxu1 %v3343_v0  ;;  %v1510_v63 = vand.u32 %v3415_v59, %v3712_v19  ;;  %v3420_v0 = vld [vmem:[%s4776_s0 + $0x54] ss:$196 sps:$4 sm:$0xff]   ;;  %v3492_v59 = vld [vmem:[%s4776_s0 + $0x384] ss:$196 sps:$4 sm:$0xff]  }
  0x35   :  { %1772 = vmatprep.subr.bf16.mxu0 %v3348_v2  ;;  %1813 = vmatprep.subr.bf16.mxu1 %v3351_v3  ;;  %v3423_v2 = vld [vmem:[%s4776_s0 + $0x5c] ss:$196 sps:$4 sm:$0xff]   ;;  %v3418_v3 = vld [vmem:[%s4776_s0 + $0x50] ss:$196 sps:$4 sm:$0xff]  }
  0x38   :  { %1773 = vmatpush1.bf16.msra.mxu0 %v3346_v6  ;;  %1814 = vmatpush1.bf16.msra.mxu1 %v3349_v7  ;;  %v3429_v6 = vld [vmem:[%s4776_s0 + $0x1e4] ss:$196 sps:$4 sm:$0xff]   ;;  %v3424_v7 = vld [vmem:[%s4776_s0 + $0x1d8] ss:$196 sps:$4 sm:$0xff]  }
  0x39   :  { %1774 = vmatprep.subr.bf16.mxu0 %v1483_v10  ;;  %1815 = vmatprep.subr.bf16.mxu1 %v1489_v11  ;;  %v3435_v10 = vld [vmem:[%s4776_s0 + $0x36c] ss:$196 sps:$4 sm:$0xff]   ;;  %v3430_v11 = vld [vmem:[%s4776_s0 + $0x360] ss:$196 sps:$4 sm:$0xff]  }
  0x3c   :  { %1775 = vmatpush1.bf16.msra.mxu0 %v1480_v12  ;;  %1816 = vmatpush1.bf16.msra.mxu1 %v1486_v13  ;;  %v3433_v12 = vld [vmem:[%s4776_s0 + $0x368] ss:$196 sps:$4 sm:$0xff]  }
  0x3d   :  { %1848 = vmatprep.subr.bf16.mxu0 %v3360_v14  ;;  %1889 = vmatprep.subr.bf16.mxu1 %v3363_v15  ;;  %v3438_v13 = vld [vmem:[%s4776_s0 + $0x4ec] ss:$196 sps:$4 sm:$0xff]   ;;  %v3441_v14 = vld [vmem:[%s4776_s0 + $0x4f4] ss:$196 sps:$4 sm:$0xff]  }
  0x3e   :  { %v3444_v15 = vld [vmem:[%s4776_s0 + $0x674] ss:$196 sps:$4 sm:$0x3f]  }
  0x3f   :  { %3205 = vmatmul.mubr.msk.bf16.vlgmr.msra.gmra.mrb[8].mxu0 %vm1447_vm2, %v3739_v30  ;;  %3206 = vmatmul.mubr.msk.bf16.vlgmr.msra.gmra.mrb[8].mxu1 %vm1447_vm2, %v3739_v30 }
  0x40   :  { %1849 = vmatpush1.bf16.msra.mxu0 %v3358_v16  ;;  %1890 = vmatpush1.bf16.msra.mxu1 %v3361_v17  ;;  %v3447_v16 = vld [vmem:[%s4776_s0 + $0x67c] ss:$196 sps:$4 sm:$0x3f]   ;;  %v3436_v17 = vld [vmem:[%s4776_s0 + $0x4e8] ss:$196 sps:$4 sm:$0xff]  }
  0x41   :  { %1850 = vmatprep.subr.bf16.mxu0 %v3366_v18  ;;  %1891 = vmatprep.subr.bf16.mxu1 %v3369_v20  ;;  %v3439_v18 = vld [vmem:[%s4776_s0 + $0x4f0] ss:$196 sps:$4 sm:$0xff]  }
  0x42   :  { %1880 = vmatprep.mubr.bf16.mxu0 %v3634_v1  ;;  %1921 = vmatprep.mubr.bf16.mxu1 %v3634_v1  ;;  %v3442_v20 = vld [vmem:[%s4776_s0 + $0x670] ss:$196 sps:$4 sm:$0x3f]  }
  0x44   :  { %1851 = vmatpush1.bf16.msra.mxu0 %v3364_v21  ;;  %1892 = vmatpush1.bf16.msra.mxu1 %v3367_v22  ;;  %v3445_v21 = vld [vmem:[%s4776_s0 + $0x678] ss:$196 sps:$4 sm:$0x3f]   ;;  %v1519_v22 = vand.u32 %v3444_v15, %v3712_v19  ;;  %v3516_v15 = vld [vmem:[%s4776_s0 + $0x20c] ss:$196 sps:$4 sm:$0xff]  }
  0x45   :  { %1852 = vmatprep.subr.bf16.mxu0 %v3372_v23  ;;  %1893 = vmatprep.subr.bf16.mxu1 %v3375_v24  ;;  %v1525_v23 = vand.u32 %v3447_v16, %v3712_v19  ;;  %v1516_v24 = vand.u32 %v3442_v20, %v3712_v19  ;;  %v3519_v16 = vld [vmem:[%s4776_s0 + $0x214] ss:$196 sps:$4 sm:$0xff]  }
  0x46   :  { %v3517_v20 = vld [vmem:[%s4776_s0 + $0x210] ss:$196 sps:$4 sm:$0xff]  }
  0x48   :  { %1853 = vmatpush1.bf16.msra.mxu0 %v3370_v25  ;;  %1894 = vmatpush1.bf16.msra.mxu1 %v3373_v26  ;;  %v1522_v25 = vand.u32 %v3445_v21, %v3712_v19  ;;  %v3450_v26 = vld [vmem:[%s4776_s0 + $0x64] ss:$196 sps:$4 sm:$0xff]   ;;  %v3522_v21 = vld [vmem:[%s4776_s0 + $0x394] ss:$196 sps:$4 sm:$0xff]  }
  0x49   :  { %1854 = vmatprep.subr.bf16.mxu0 %v3378_v27  ;;  %1895 = vmatprep.subr.bf16.mxu1 %v3381_v29  ;;  %v3453_v27 = vld [vmem:[%s4776_s0 + $0x6c] ss:$196 sps:$4 sm:$0xff]  }
  0x4a   :  { %v3451_v29 = vld [vmem:[%s4776_s0 + $0x68] ss:$196 sps:$4 sm:$0xff]  }
  0x4c   :  { %1855 = vmatpush1.bf16.msra.mxu0 %v3376_v32  ;;  %1896 = vmatpush1.bf16.msra.mxu1 %v3379_v34  ;;  %v3459_v32 = vld [vmem:[%s4776_s0 + $0x1f4] ss:$196 sps:$4 sm:$0xff]  }
  0x4d   :  { %1856 = vmatprep.subr.bf16.mxu0 %v1495_v36  ;;  %1897 = vmatprep.subr.bf16.mxu1 %v1501_v37  ;;  %v3457_v34 = vld [vmem:[%s4776_s0 + $0x1f0] ss:$196 sps:$4 sm:$0xff]   ;;  %v3465_v36 = vld [vmem:[%s4776_s0 + $0x37c] ss:$196 sps:$4 sm:$0xff]  }
  0x4e   :  { %v3460_v37 = vld [vmem:[%s4776_s0 + $0x370] ss:$196 sps:$4 sm:$0xff]  }
  0x50   :  { %1857 = vmatpush1.bf16.msra.mxu0 %v1492_v38  ;;  %1898 = vmatpush1.bf16.msra.mxu1 %v1498_v39  ;;  %v3463_v38 = vld [vmem:[%s4776_s0 + $0x378] ss:$196 sps:$4 sm:$0xff]  }
  0x51   :  { %1930 = vmatprep.subr.bf16.mxu0 %v3390_v40  ;;  %1971 = vmatprep.subr.bf16.mxu1 %v3393_v41  ;;  %v3468_v39 = vld [vmem:[%s4776_s0 + $0x4fc] ss:$196 sps:$4 sm:$0xff]   ;;  %v3474_v40 = vld [vmem:[%s4776_s0 + $0x684] ss:$196 sps:$4 sm:$0x3f]  }
  0x52   :  { %v3471_v41 = vld [vmem:[%s4776_s0 + $0x504] ss:$196 sps:$4 sm:$0xff]  }
  0x53   :  { %3207 = vmatmul.mubr.msk.bf16.vlgmr.msra.gmra.mrb[12].mxu0 %vm1447_vm2, %v3739_v30  ;;  %3208 = vmatmul.mubr.msk.bf16.vlgmr.msra.gmra.mrb[12].mxu1 %vm1447_vm2, %v3739_v30 }
  0x54   :  { %1931 = vmatpush1.bf16.msra.mxu0 %v3388_v42  ;;  %1972 = vmatpush1.bf16.msra.mxu1 %v3391_v43  ;;  %v3477_v42 = vld [vmem:[%s4776_s0 + $0x68c] ss:$196 sps:$4 sm:$0x3f]   ;;  %v3466_v43 = vld [vmem:[%s4776_s0 + $0x4f8] ss:$196 sps:$4 sm:$0xff]  }
  0x55   :  { %1932 = vmatprep.subr.bf16.mxu0 %v3396_v44  ;;  %1973 = vmatprep.subr.bf16.mxu1 %v3399_v45  ;;  %v3472_v44 = vld [vmem:[%s4776_s0 + $0x680] ss:$196 sps:$4 sm:$0x3f]  }
  0x56   :  { %1962 = vmatprep.mubr.bf16.mxu0 %v3634_v1  ;;  %2003 = vmatprep.mubr.bf16.mxu1 %v3634_v1  ;;  %v3469_v45 = vld [vmem:[%s4776_s0 + $0x500] ss:$196 sps:$4 sm:$0xff]  }
  0x58   :  { %1933 = vmatpush1.bf16.msra.mxu0 %v3394_v46  ;;  %1974 = vmatpush1.bf16.msra.mxu1 %v3397_v47  ;;  %v3475_v46 = vld [vmem:[%s4776_s0 + $0x688] ss:$196 sps:$4 sm:$0x3f]   ;;  %v1531_v47 = vand.u32 %v3474_v40, %v3712_v19  ;;  %v3538_v40 = vld [vmem:[%s4776_s0 + $0x90] ss:$196 sps:$4 sm:$0xff]  }
  0x59   :  { %1934 = vmatprep.subr.bf16.mxu0 %v3402_v48  ;;  %1975 = vmatprep.subr.bf16.mxu1 %v3405_v49  ;;  %v1537_v48 = vand.u32 %v3477_v42, %v3712_v19  ;;  %v1528_v49 = vand.u32 %v3472_v44, %v3712_v19  ;;  %v3546_v42 = vld [vmem:[%s4776_s0 + $0x21c] ss:$196 sps:$4 sm:$0xff]  }
  0x5a   :  { %v3544_v44 = vld [vmem:[%s4776_s0 + $0x218] ss:$196 sps:$4 sm:$0xff]  }
  0x5c   :  { %1935 = vmatpush1.bf16.msra.mxu0 %v3400_v50  ;;  %1976 = vmatpush1.bf16.msra.mxu1 %v3403_v51  ;;  %v1534_v50 = vand.u32 %v3475_v46, %v3712_v19  ;;  %v3480_v51 = vld [vmem:[%s4776_s0 + $0x74] ss:$196 sps:$4 sm:$0xff]   ;;  %v3552_v46 = vld [vmem:[%s4776_s0 + $0x3a4] ss:$196 sps:$4 sm:$0xff]  }
  0x5d   :  { %1936 = vmatprep.subr.bf16.mxu0 %v3408_v52  ;;  %1977 = vmatprep.subr.bf16.mxu1 %v3411_v53  ;;  %v3483_v52 = vld [vmem:[%s4776_s0 + $0x7c] ss:$196 sps:$4 sm:$0xff]   ;;  %v3478_v53 = vld [vmem:[%s4776_s0 + $0x70] ss:$196 sps:$4 sm:$0xff]  }
  0x60   :  { %1937 = vmatpush1.bf16.msra.mxu0 %v3406_v56  ;;  %1978 = vmatpush1.bf16.msra.mxu1 %v3409_v58  ;;  %v3489_v56 = vld [vmem:[%s4776_s0 + $0x204] ss:$196 sps:$4 sm:$0xff]  }
  0x61   :  { %1938 = vmatprep.subr.bf16.mxu0 %v1507_v60  ;;  %1979 = vmatprep.subr.bf16.mxu1 %v1513_v61  ;;  %v3487_v58 = vld [vmem:[%s4776_s0 + $0x200] ss:$196 sps:$4 sm:$0xff]   ;;  %v3493_v61 = vld [vmem:[%s4776_s0 + $0x388] ss:$196 sps:$4 sm:$0xff]  }
  0x62   :  { %v3490_v60 = vld [vmem:[%s4776_s0 + $0x380] ss:$196 sps:$4 sm:$0xff]  }
  0x64   :  { %1939 = vmatpush1.bf16.msra.mxu0 %v1504_v62  ;;  %1980 = vmatpush1.bf16.msra.mxu1 %v1510_v63  ;;  %v3498_v62 = vld [vmem:[%s4776_s0 + $0x50c] ss:$196 sps:$4 sm:$0xff]   ;;  %v3501_v63 = vld [vmem:[%s4776_s0 + $0x514] ss:$196 sps:$4 sm:$0xff]  }
  0x65   :  { %2012 = vmatprep.subr.bf16.mxu0 %v3420_v0  ;;  %2053 = vmatprep.subr.bf16.mxu1 %v3423_v2  ;;  %v3504_v0 = vld [vmem:[%s4776_s0 + $0x694] ss:$196 sps:$4 sm:$0x3f]   ;;  %v3507_v2 = vld [vmem:[%s4776_s0 + $0x69c] ss:$196 sps:$4 sm:$0x3f]  }
  0x67   :  { %3209 = vmatmul.mubr.msk.bf16.vlgmr.msra.gmra.mrb[16].mxu0 %vm1447_vm2, %v3739_v30  ;;  %3210 = vmatmul.mubr.msk.bf16.vlgmr.msra.gmra.mrb[16].mxu1 %vm1447_vm2, %v3739_v30 }
  0x68   :  { %2013 = vmatpush1.bf16.msra.mxu0 %v3418_v3  ;;  %2054 = vmatpush1.bf16.msra.mxu1 %v3421_v4  ;;  %v3496_v3 = vld [vmem:[%s4776_s0 + $0x508] ss:$196 sps:$4 sm:$0xff]   ;;  %v3499_v4 = vld [vmem:[%s4776_s0 + $0x510] ss:$196 sps:$4 sm:$0xff]  }
  0x69   :  { %2014 = vmatprep.subr.bf16.mxu0 %v3426_v5  ;;  %2055 = vmatprep.subr.bf16.mxu1 %v3429_v6  ;;  %v3502_v5 = vld [vmem:[%s4776_s0 + $0x690] ss:$196 sps:$4 sm:$0x3f]   ;;  %v3505_v6 = vld [vmem:[%s4776_s0 + $0x698] ss:$196 sps:$4 sm:$0x3f]  }
  0x6a   :  { %2044 = vmatprep.mubr.bf16.mxu0 %v3634_v1  ;;  %2085 = vmatprep.mubr.bf16.mxu1 %v3634_v1 }
  0x6c   :  { %2015 = vmatpush1.bf16.msra.mxu0 %v3424_v7  ;;  %2056 = vmatpush1.bf16.msra.mxu1 %v3427_v8  ;;  %v1543_v7 = vand.u32 %v3504_v0, %v3712_v19  ;;  %v1549_v8 = vand.u32 %v3507_v2, %v3712_v19  ;;  %v3574_v0 = vld [vmem:[%s4776_s0 + $0xa8] ss:$196 sps:$4 sm:$0xff]  }
  0x6d   :  { %2016 = vmatprep.subr.bf16.mxu0 %v3432_v9  ;;  %2057 = vmatprep.subr.bf16.mxu1 %v3435_v10  ;;  %v1540_v9 = vand.u32 %v3502_v5, %v3712_v19  ;;  %v1546_v10 = vand.u32 %v3505_v6, %v3712_v19  ;;  %v3573_v2 = vld [vmem:[%s4776_s0 + $0x22c] ss:$196 sps:$4 sm:$0xff]   ;;  %v3579_v6 = vld [vmem:[%s4776_s0 + $0x3b4] ss:$196 sps:$4 sm:$0xff]  }
  0x6e   :  { %v3580_v5 = vld [vmem:[%s4776_s0 + $0x230] ss:$196 sps:$4 sm:$0xff]  }
  0x70   :  { %2017 = vmatpush1.bf16.msra.mxu0 %v3430_v11  ;;  %2058 = vmatpush1.bf16.msra.mxu1 %v3433_v12  ;;  %v3510_v11 = vld [vmem:[%s4776_s0 + $0x84] ss:$196 sps:$4 sm:$0xff]   ;;  %v3513_v12 = vld [vmem:[%s4776_s0 + $0x8c] ss:$196 sps:$4 sm:$0xff]  }
  0x71   :  { %2018 = vmatprep.subr.bf16.mxu0 %v3438_v13  ;;  %2059 = vmatprep.subr.bf16.mxu1 %v3441_v14  ;;  %v3508_v13 = vld [vmem:[%s4776_s0 + $0x80] ss:$196 sps:$4 sm:$0xff]   ;;  %v3511_v14 = vld [vmem:[%s4776_s0 + $0x88] ss:$196 sps:$4 sm:$0xff]  }
  0x74   :  { %2019 = vmatpush1.bf16.msra.mxu0 %v3436_v17  ;;  %2060 = vmatpush1.bf16.msra.mxu1 %v3439_v18  ;;  %v4246_v17 = vld [vmem:[%s4777_s1] sm:$0x7]  ;;  %v3514_v18 = vld [vmem:[%s4776_s0 + $0x208] ss:$196 sps:$4 sm:$0xff]  }
  0x75   :  { %2020 = vmatprep.subr.bf16.mxu0 %v1519_v22  ;;  %2061 = vmatprep.subr.bf16.mxu1 %v1525_v23  ;;  %v3525_v22 = vld [vmem:[%s4776_s0 + $0x39c] ss:$196 sps:$4 sm:$0xff]   ;;  %v3520_v23 = vld [vmem:[%s4776_s0 + $0x390] ss:$196 sps:$4 sm:$0xff]  }
  0x78   :  { %2021 = vmatpush1.bf16.msra.mxu0 %v1516_v24  ;;  %2062 = vmatpush1.bf16.msra.mxu1 %v1522_v25  ;;  %v3523_v24 = vld [vmem:[%s4776_s0 + $0x398] ss:$196 sps:$4 sm:$0xff]   ;;  %v3534_v25 = vld [vmem:[%s4776_s0 + $0x6a4] ss:$196 sps:$4 sm:$0x3f]  }
  0x79   :  { %2094 = vmatprep.subr.bf16.mxu0 %v3450_v26  ;;  %2135 = vmatprep.subr.bf16.mxu1 %v3453_v27  ;;  %v3537_v26 = vld [vmem:[%s4776_s0 + $0x6ac] ss:$196 sps:$4 sm:$0x3f]   ;;  %v3528_v27 = vld [vmem:[%s4776_s0 + $0x51c] ss:$196 sps:$4 sm:$0xff]  }
  0x7b   :  { %3211 = vmatmul.mubr.msk.bf16.vlgmr.msra.gmra.mrb[20].mxu0 %vm1447_vm2, %v3739_v30  ;;  %3212 = vmatmul.mubr.msk.bf16.vlgmr.msra.gmra.mrb[20].mxu1 %vm1447_vm2, %v3739_v30 }
  0x7c   :  { %2095 = vmatpush1.bf16.msra.mxu0 %v3448_v28  ;;  %2136 = vmatpush1.bf16.msra.mxu1 %v3451_v29  ;;  %v3531_v28 = vld [vmem:[%s4776_s0 + $0x524] ss:$196 sps:$4 sm:$0xff]   ;;  %v3526_v29 = vld [vmem:[%s4776_s0 + $0x518] ss:$196 sps:$4 sm:$0xff]  }
  0x7d   :  { %2096 = vmatprep.subr.bf16.mxu0 %v3456_v31  ;;  %2137 = vmatprep.subr.bf16.mxu1 %v3459_v32  ;;  %v3529_v31 = vld [vmem:[%s4776_s0 + $0x520] ss:$196 sps:$4 sm:$0xff]  }
  0x7e   :  { %2126 = vmatprep.mubr.bf16.mxu0 %v3634_v1  ;;  %2167 = vmatprep.mubr.bf16.mxu1 %v3634_v1  ;;  %v3532_v32 = vld [vmem:[%s4776_s0 + $0x6a0] ss:$196 sps:$4 sm:$0x3f]  }
  0x80   :  { %2097 = vmatpush1.bf16.msra.mxu0 %v3454_v33  ;;  %2138 = vmatpush1.bf16.msra.mxu1 %v3457_v34  ;;  %v3535_v33 = vld [vmem:[%s4776_s0 + $0x6a8] ss:$196 sps:$4 sm:$0x3f]   ;;  %v1555_v34 = vand.u32 %v3534_v25, %v3712_v19  ;;  %v3606_v25 = vld [vmem:[%s4776_s0 + $0xbc] ss:$196 sps:$4 sm:$0xff]  }
  0x81   :  { %2098 = vmatprep.subr.bf16.mxu0 %v3462_v35  ;;  %2139 = vmatprep.subr.bf16.mxu1 %v3465_v36  ;;  %v1561_v35 = vand.u32 %v3537_v26, %v3712_v19  ;;  %v1552_v36 = vand.u32 %v3532_v32, %v3712_v19  ;;  %v3598_v26 = vld [vmem:[%s4776_s0 + $0xb0] ss:$196 sps:$4 sm:$0xff]   ;;  %v3610_v32 = vld [vmem:[%s4776_s0 + $0x240] ss:$196 sps:$4 sm:$0xff]  }
  0x84   :  { %2099 = vmatpush1.bf16.msra.mxu0 %v3460_v37  ;;  %2140 = vmatpush1.bf16.msra.mxu1 %v3463_v38  ;;  %v1558_v37 = vand.u32 %v3535_v33, %v3712_v19  ;;  %v3540_v38 = vld [vmem:[%s4776_s0 + $0x94] ss:$196 sps:$4 sm:$0xff]   ;;  %v3609_v33 = vld [vmem:[%s4776_s0 + $0x3c4] ss:$196 sps:$4 sm:$0xff]  }
  0x85   :  { %2100 = vmatprep.subr.bf16.mxu0 %v3468_v39  ;;  %2141 = vmatprep.subr.bf16.mxu1 %v3471_v41  ;;  %v3543_v39 = vld [vmem:[%s4776_s0 + $0x9c] ss:$196 sps:$4 sm:$0xff]  }
  0x86   :  { %v3541_v41 = vld [vmem:[%s4776_s0 + $0x98] ss:$196 sps:$4 sm:$0xff]  }
  0x88   :  { %2101 = vmatpush1.bf16.msra.mxu0 %v3466_v43  ;;  %2142 = vmatpush1.bf16.msra.mxu1 %v3469_v45  ;;  %v3549_v43 = vld [vmem:[%s4776_s0 + $0x224] ss:$196 sps:$4 sm:$0xff]  }
  0x89   :  { %2102 = vmatprep.subr.bf16.mxu0 %v1531_v47  ;;  %2143 = vmatprep.subr.bf16.mxu1 %v1537_v48  ;;  %v3547_v45 = vld [vmem:[%s4776_s0 + $0x220] ss:$196 sps:$4 sm:$0xff]   ;;  %v3555_v47 = vld [vmem:[%s4776_s0 + $0x3ac] ss:$196 sps:$4 sm:$0xff]  }
  0x8a   :  { %v3550_v48 = vld [vmem:[%s4776_s0 + $0x3a0] ss:$196 sps:$4 sm:$0xff]  }
  0x8c   :  { %2103 = vmatpush1.bf16.msra.mxu0 %v1528_v49  ;;  %2144 = vmatpush1.bf16.msra.mxu1 %v1534_v50  ;;  %v3553_v49 = vld [vmem:[%s4776_s0 + $0x3a8] ss:$196 sps:$4 sm:$0xff]  }
  0x8d   :  { %2176 = vmatprep.subr.bf16.mxu0 %v3480_v51  ;;  %2217 = vmatprep.subr.bf16.mxu1 %v3483_v52  ;;  %v3558_v50 = vld [vmem:[%s4776_s0 + $0x52c] ss:$196 sps:$4 sm:$0xff]   ;;  %v3561_v51 = vld [vmem:[%s4776_s0 + $0x534] ss:$196 sps:$4 sm:$0xff]  }
  0x8e   :  { %v3564_v52 = vld [vmem:[%s4776_s0 + $0x6b4] ss:$196 sps:$4 sm:$0x3f]  }
  0x8f   :  { %3213 = vmatmul.mubr.msk.bf16.vlgmr.msra.gmra.mrb[24].mxu0 %vm1447_vm2, %v3739_v30  ;;  %3214 = vmatmul.mubr.msk.bf16.vlgmr.msra.gmra.mrb[24].mxu1 %vm1447_vm2, %v3739_v30  ;;  %v3495_v30 = vld [vmem:[%s4776_s0 + $0x38c] ss:$196 sps:$4 sm:$0xff]  }
  0x90   :  { %2177 = vmatpush1.bf16.msra.mxu0 %v3478_v53  ;;  %2218 = vmatpush1.bf16.msra.mxu1 %v3481_v54  ;;  %v3567_v53 = vld [vmem:[%s4776_s0 + $0x6bc] ss:$196 sps:$4 sm:$0x3f]   ;;  %v3556_v54 = vld [vmem:[%s4776_s0 + $0x528] ss:$196 sps:$4 sm:$0xff]  }
  0x91   :  { %2178 = vmatprep.subr.bf16.mxu0 %v3486_v55  ;;  %2219 = vmatprep.subr.bf16.mxu1 %v3489_v56  ;;  %v3559_v55 = vld [vmem:[%s4776_s0 + $0x530] ss:$196 sps:$4 sm:$0xff]  }
  0x92   :  { %2208 = vmatprep.mubr.bf16.mxu0 %v3634_v1  ;;  %2249 = vmatprep.mubr.bf16.mxu1 %v3634_v1  ;;  %v3562_v56 = vld [vmem:[%s4776_s0 + $0x6b0] ss:$196 sps:$4 sm:$0x3f]  }
  0x94   :  { %2179 = vmatpush1.bf16.msra.mxu0 %v3484_v57  ;;  %2220 = vmatpush1.bf16.msra.mxu1 %v3487_v58  ;;  %v3565_v57 = vld [vmem:[%s4776_s0 + $0x6b8] ss:$196 sps:$4 sm:$0x3f]   ;;  %v1567_v58 = vand.u32 %v3564_v52, %v3712_v19 }
  0x95   :  { %2180 = vmatprep.subr.bf16.mxu0 %v3492_v59  ;;  %2221 = vmatprep.subr.bf16.mxu1 %v3495_v30  ;;  %v1573_v59 = vand.u32 %v3567_v53, %v3712_v19  ;;  %v1564_v30 = vand.u32 %v3562_v56, %v3712_v19  ;;  %v3628_v56 = vld [vmem:[%s4776_s0 + $0xc0] ss:$196 sps:$4 sm:$0xff]  }
  0x98   :  { %2181 = vmatpush1.bf16.msra.mxu0 %v3490_v60  ;;  %2222 = vmatpush1.bf16.msra.mxu1 %v3493_v61  ;;  %v1570_v60 = vand.u32 %v3565_v57, %v3712_v19  ;;  %v3570_v61 = vld [vmem:[%s4776_s0 + $0xa4] ss:$196 sps:$4 sm:$0xff]   ;;  %v3636_v57 = vmov 0.0  }
  0x99   :  { %2182 = vmatprep.subr.bf16.mxu0 %v3498_v62  ;;  %2223 = vmatprep.subr.bf16.mxu1 %v3501_v63  ;;  %v3576_v62 = vld [vmem:[%s4776_s0 + $0xac] ss:$196 sps:$4 sm:$0xff]   ;;  %v3568_v63 = vld [vmem:[%s4776_s0 + $0xa0] ss:$196 sps:$4 sm:$0xff]  }
  0x9c   :  { %2183 = vmatpush1.bf16.msra.mxu0 %v3496_v3  ;;  %2224 = vmatpush1.bf16.msra.mxu1 %v3499_v4  ;;  %v3582_v3 = vld [vmem:[%s4776_s0 + $0x234] ss:$196 sps:$4 sm:$0xff]   ;;  %v3571_v4 = vld [vmem:[%s4776_s0 + $0x228] ss:$196 sps:$4 sm:$0xff]  }
  0x9d   :  { %2184 = vmatprep.subr.bf16.mxu0 %v1543_v7  ;;  %2225 = vmatprep.subr.bf16.mxu1 %v1549_v8  ;;  %v3588_v7 = vld [vmem:[%s4776_s0 + $0x3bc] ss:$196 sps:$4 sm:$0xff]   ;;  %v3577_v8 = vld [vmem:[%s4776_s0 + $0x3b0] ss:$196 sps:$4 sm:$0xff]  }
  0xa0   :  { %2185 = vmatpush1.bf16.msra.mxu0 %v1540_v9  ;;  %2226 = vmatpush1.bf16.msra.mxu1 %v1546_v10  ;;  %v3585_v9 = vld [vmem:[%s4776_s0 + $0x53c] ss:$196 sps:$4 sm:$0xff]  }
  0xa1   :  { %2258 = vmatprep.subr.bf16.mxu0 %v3510_v11  ;;  %2299 = vmatprep.subr.bf16.mxu1 %v3513_v12  ;;  %v3586_v10 = vld [vmem:[%s4776_s0 + $0x3b8] ss:$196 sps:$4 sm:$0xff]   ;;  %v3591_v11 = vld [vmem:[%s4776_s0 + $0x6c4] ss:$196 sps:$4 sm:$0x3f]  }
  0xa2   :  { %v3594_v12 = vld [vmem:[%s4776_s0 + $0x544] ss:$196 sps:$4 sm:$0xff]  }
  0xa3   :  { %3215 = vmatmul.mubr.msk.bf16.vlgmr.msra.gmra.mrb[28].mxu0 %vm1447_vm2, %v4246_v17  ;;  %3216 = vmatmul.mubr.msk.bf16.vlgmr.msra.gmra.mrb[28].mxu1 %vm1447_vm2, %v4246_v17 }
  0xa4   :  { %2259 = vmatpush1.bf16.msra.mxu0 %v3508_v13  ;;  %2300 = vmatpush1.bf16.msra.mxu1 %v3511_v14  ;;  %v3597_v13 = vld [vmem:[%s4776_s0 + $0x6cc] ss:$196 sps:$4 sm:$0x3f]   ;;  %v3583_v14 = vld [vmem:[%s4776_s0 + $0x538] ss:$196 sps:$4 sm:$0xff]  }
  0xa5   :  { %2260 = vmatprep.subr.bf16.mxu0 %v3516_v15  ;;  %2301 = vmatprep.subr.bf16.mxu1 %v3519_v16  ;;  %v3589_v15 = vld [vmem:[%s4776_s0 + $0x6c0] ss:$196 sps:$4 sm:$0x3f]  }
  0xa6   :  { %2290 = vmatprep.mubr.bf16.mxu0 %v3634_v1  ;;  %2331 = vmatprep.mubr.bf16.mxu1 %v3634_v1  ;;  %v3592_v16 = vld [vmem:[%s4776_s0 + $0x540] ss:$196 sps:$4 sm:$0xff]  }
  0xa8   :  { %2261 = vmatpush1.bf16.msra.mxu0 %v3514_v18  ;;  %2302 = vmatpush1.bf16.msra.mxu1 %v3517_v20  ;;  %v3595_v18 = vld [vmem:[%s4776_s0 + $0x6c8] ss:$196 sps:$4 sm:$0x3f]   ;;  %v1579_v20 = vand.u32 %v3591_v11, %v3712_v19 }
  0xa9   :  { %2262 = vmatprep.subr.bf16.mxu0 %v3522_v21  ;;  %2303 = vmatprep.subr.bf16.mxu1 %v3525_v22  ;;  %v1585_v21 = vand.u32 %v3597_v13, %v3712_v19  ;;  %v1576_v22 = vand.u32 %v3589_v15, %v3712_v19 }
  0xac   :  { %2263 = vmatpush1.bf16.msra.mxu0 %v3520_v23  ;;  %2304 = vmatpush1.bf16.msra.mxu1 %v3523_v24  ;;  %v1582_v23 = vand.u32 %v3595_v18, %v3712_v19  ;;  %v3600_v24 = vld [vmem:[%s4776_s0 + $0xb4] ss:$196 sps:$4 sm:$0xff]  }
  0xad   :  { %2264 = vmatprep.subr.bf16.mxu0 %v3528_v27  ;;  %2305 = vmatprep.subr.bf16.mxu1 %v3531_v28  ;;  %v3604_v27 = vld [vmem:[%s4776_s0 + $0xb8] ss:$196 sps:$4 sm:$0xff]  }
  0xae   :  { %v3603_v28 = vld [vmem:[%s4776_s0 + $0x23c] ss:$196 sps:$4 sm:$0xff]  }
  0xb0   :  { %2265 = vmatpush1.bf16.msra.mxu0 %v3526_v29  ;;  %2306 = vmatpush1.bf16.msra.mxu1 %v3529_v31  ;;  %v3612_v29 = vld [vmem:[%s4776_s0 + $0x244] ss:$196 sps:$4 sm:$0xff]   ;;  %v3601_v31 = vld [vmem:[%s4776_s0 + $0x238] ss:$196 sps:$4 sm:$0xff]  }
  0xb1   :  { %2266 = vmatprep.subr.bf16.mxu0 %v1555_v34  ;;  %2307 = vmatprep.subr.bf16.mxu1 %v1561_v35  ;;  %v3618_v34 = vld [vmem:[%s4776_s0 + $0x3cc] ss:$196 sps:$4 sm:$0xff]   ;;  %v3607_v35 = vld [vmem:[%s4776_s0 + $0x3c0] ss:$196 sps:$4 sm:$0xff]  }
  0xb4   :  { %2267 = vmatpush1.bf16.msra.mxu0 %v1552_v36  ;;  %2308 = vmatpush1.bf16.msra.mxu1 %v1558_v37  ;;  %v3615_v36 = vld [vmem:[%s4776_s0 + $0x54c] ss:$196 sps:$4 sm:$0xff]  }
  0xb5   :  { %2340 = vmatprep.subr.bf16.mxu0 %v3540_v38  ;;  %2381 = vmatprep.subr.bf16.mxu1 %v3543_v39  ;;  %v3616_v37 = vld [vmem:[%s4776_s0 + $0x3c8] ss:$196 sps:$4 sm:$0xff]   ;;  %v3621_v38 = vld [vmem:[%s4776_s0 + $0x6d4] ss:$196 sps:$4 sm:$0x3f]  }
  0xb6   :  { %v3627_v39 = vld [vmem:[%s4776_s0 + $0x6dc] ss:$196 sps:$4 sm:$0x3f]  }
  0xb7   :  { %3217 = vmatmul.mubr.msk.bf16.vlgmr.msra.gmra.mrb[32].mxu0 %vm1447_vm2, %v4246_v17  ;;  %3218 = vmatmul.mubr.msk.bf16.vlgmr.msra.gmra.mrb[32].mxu1 %vm1447_vm2, %v4246_v17 }
  0xb8   :  { %2341 = vmatpush1.bf16.msra.mxu0 %v3538_v40  ;;  %2382 = vmatpush1.bf16.msra.mxu1 %v3541_v41  ;;  %v3613_v40 = vld [vmem:[%s4776_s0 + $0x548] ss:$196 sps:$4 sm:$0xff]   ;;  %v3619_v41 = vld [vmem:[%s4776_s0 + $0x6d0] ss:$196 sps:$4 sm:$0x3f]  }
  0xb9   :  { %2342 = vmatprep.subr.bf16.mxu0 %v3546_v42  ;;  %2383 = vmatprep.subr.bf16.mxu1 %v3549_v43  ;;  %v3622_v42 = vld [vmem:[%s4776_s0 + $0x550] ss:$196 sps:$4 sm:$0xff]   ;;  %v3625_v43 = vld [vmem:[%s4776_s0 + $0x6d8] ss:$196 sps:$4 sm:$0x3f]  }
  0xba   :  { %2372 = vmatprep.mubr.bf16.mxu0 %v3634_v1  ;;  %2413 = vmatprep.mubr.bf16.mxu1 %v3634_v1  ;;  %v1594_v52 = vand.u32 %v3625_v43, %v3712_v19 }
  0xbc   :  { %2343 = vmatpush1.bf16.msra.mxu0 %v3544_v44  ;;  %2384 = vmatpush1.bf16.msra.mxu1 %v3547_v45  ;;  %v1591_v44 = vand.u32 %v3621_v38, %v3712_v19  ;;  %v1597_v45 = vand.u32 %v3627_v39, %v3712_v19 }
  0xbd   :  { %2344 = vmatprep.subr.bf16.mxu0 %v3552_v46  ;;  %2385 = vmatprep.subr.bf16.mxu1 %v3555_v47 }
  0xc0   :  { %2345 = vmatpush1.bf16.msra.mxu0 %v3550_v48  ;;  %2386 = vmatpush1.bf16.msra.mxu1 %v3553_v49 }
  0xc1   :  { %2346 = vmatprep.subr.bf16.mxu0 %v3558_v50  ;;  %2387 = vmatprep.subr.bf16.mxu1 %v3561_v51  ;;  %v1588_v51 = vand.u32 %v3619_v41, %v3712_v19 }
  0xc4   :  { %2347 = vmatpush1.bf16.msra.mxu0 %v3556_v54  ;;  %2388 = vmatpush1.bf16.msra.mxu1 %v3559_v55 }
  0xc5   :  { %2348 = vmatprep.subr.bf16.mxu0 %v1567_v58  ;;  %2389 = vmatprep.subr.bf16.mxu1 %v1573_v59  ;;  %v3629_v58 = vld [vmem:[%s4776_s0 + $0x248] ss:$196 sps:$4 sm:$0xff]   ;;  %v3630_v59 = vld [vmem:[%s4776_s0 + $0x3d0] ss:$196 sps:$4 sm:$0xff]  }
  0xc8   :  { %2349 = vmatpush1.bf16.msra.mxu0 %v1564_v30  ;;  %2390 = vmatpush1.bf16.msra.mxu1 %v1570_v60  ;;  %v3631_v30 = vld [vmem:[%s4776_s0 + $0x558] ss:$196 sps:$4 sm:$0xff]   ;;  %v3632_v60 = vld [vmem:[%s4776_s0 + $0x6e0] ss:$196 sps:$4 sm:$0x3f]  }
  0xc9   :  { %2422 = vmatprep.subr.bf16.mxu0 %v3570_v61  ;;  %2463 = vmatprep.subr.bf16.mxu1 %v3576_v62 }
  0xcb   :  { %3219 = vmatmul.mubr.msk.bf16.vlgmr.msra.gmra.mrb[36].mxu0 %vm1447_vm2, %v4246_v17  ;;  %3220 = vmatmul.mubr.msk.bf16.vlgmr.msra.gmra.mrb[36].mxu1 %vm1447_vm2, %v4246_v17 }
  0xcc   :  { %2423 = vmatpush1.bf16.msra.mxu0 %v3568_v63  ;;  %2464 = vmatpush1.bf16.msra.mxu1 %v3574_v0 }
  0xcd   :  { %2424 = vmatprep.subr.bf16.mxu0 %v3573_v2  ;;  %2465 = vmatprep.subr.bf16.mxu1 %v3582_v3  ;;  %v1600_v3 = vand.u32 %v3632_v60, %v3712_v19 }
  0xce   :  { %2454 = vmatprep.mubr.bf16.mxu0 %v3634_v1  ;;  %2495 = vmatprep.mubr.bf16.mxu1 %v3634_v1 }
  0xd0   :  { %2425 = vmatpush1.bf16.msra.mxu0 %v3571_v4  ;;  %2466 = vmatpush1.bf16.msra.mxu1 %v3580_v5 }
  0xd1   :  { %2426 = vmatprep.subr.bf16.mxu0 %v3579_v6  ;;  %2467 = vmatprep.subr.bf16.mxu1 %v3588_v7 }
  0xd4   :  { %2427 = vmatpush1.bf16.msra.mxu0 %v3577_v8  ;;  %2468 = vmatpush1.bf16.msra.mxu1 %v3586_v10 }
  0xd5   :  { %2428 = vmatprep.subr.bf16.mxu0 %v3585_v9  ;;  %2469 = vmatprep.subr.bf16.mxu1 %v3594_v12 }
  0xd8   :  { %2429 = vmatpush1.bf16.msra.mxu0 %v3583_v14  ;;  %2470 = vmatpush1.bf16.msra.mxu1 %v3592_v16 }
  0xd9   :  { %2430 = vmatprep.subr.bf16.mxu0 %v1579_v20  ;;  %2471 = vmatprep.subr.bf16.mxu1 %v1585_v21 }
  0xdc   :  { %2431 = vmatpush1.bf16.msra.mxu0 %v1576_v22  ;;  %2472 = vmatpush1.bf16.msra.mxu1 %v1582_v23 }
  0xdd   :  { %2504 = vmatprep.subr.bf16.mxu0 %v3600_v24  ;;  %2545 = vmatprep.subr.bf16.mxu1 %v3606_v25 }
  0xdf   :  { %3221 = vmatmul.mubr.msk.bf16.vlgmr.msra.gmra.mrb[40].mxu0 %vm1447_vm2, %v4246_v17  ;;  %3222 = vmatmul.mubr.msk.bf16.vlgmr.msra.gmra.mrb[40].mxu1 %vm1447_vm2, %v4246_v17 }
  0xe0   :  { %2505 = vmatpush1.bf16.msra.mxu0 %v3598_v26  ;;  %2546 = vmatpush1.bf16.msra.mxu1 %v3604_v27 }
  0xe1   :  { %2506 = vmatprep.subr.bf16.mxu0 %v3603_v28  ;;  %2547 = vmatprep.subr.bf16.mxu1 %v3612_v29 }
  0xe2   :  { %2536 = vmatprep.mubr.bf16.mxu0 %v3634_v1  ;;  %2577 = vmatprep.mubr.bf16.mxu1 %v3634_v1  ;;  %v3624_v1 = vld [vmem:[%s4776_s0 + $0x554] ss:$196 sps:$4 sm:$0xff]   ;;  %s3638_s0 = smov 96  }
  0xe4   :  { %2507 = vmatpush1.bf16.msra.mxu0 %v3601_v31  ;;  %2548 = vmatpush1.bf16.msra.mxu1 %v3610_v32 }
  0xe5   :  { %2508 = vmatprep.subr.bf16.mxu0 %v3609_v33  ;;  %2549 = vmatprep.subr.bf16.mxu1 %v3618_v34 }
  0xe8   :  { %2509 = vmatpush1.bf16.msra.mxu0 %v3607_v35  ;;  %2550 = vmatpush1.bf16.msra.mxu1 %v3616_v37 }
  0xe9   :  { %2510 = vmatprep.subr.bf16.mxu0 %v3615_v36  ;;  %2551 = vmatprep.subr.bf16.mxu1 %v3624_v1 }
  0xea   :  { %v4508_v46 = vpop.f32.mrb[0].mxu0  ;;  %v4510_v47 = vpop.f32.mrb[0].mxu1 }
  0xeb   :  { %v4512_v48 = vpop.f32.mrb[1].mxu0  ;;  %v4514_v49 = vpop.f32.mrb[1].mxu1 }
  0xec   :  { %v1640_v50 = vpop.f32.mrb[2].mxu0  ;;  %2511 = vmatpush1.bf16.msra.mxu0 %v3613_v40  ;;  %2552 = vmatpush1.bf16.msra.mxu1 %v3622_v42  ;;  %v1681_v53 = vpop.f32.mrb[2].mxu1 }
  0xed   :  { %v1641_v54 = vpop.f32.mrb[3].mxu0  ;;  %2512 = vmatprep.subr.bf16.mxu0 %v1591_v44  ;;  %2553 = vmatprep.subr.bf16.mxu1 %v1597_v45  ;;  %v1682_v55 = vpop.f32.mrb[3].mxu1 }
  0xf0   :  { %2513 = vmatpush1.bf16.msra.mxu0 %v1588_v51  ;;  %2554 = vmatpush1.bf16.msra.mxu1 %v1594_v52 }
  0xf1   :  { %3246 = vmatprep.subr.bf16.mxu0 %v3636_v57 }
  0xf3   :  { %3223 = vmatmul.mubr.msk.bf16.vlgmr.msra.gmra.mrb[44].mxu0 %vm1447_vm2, %v4246_v17  ;;  %3224 = vmatmul.mubr.msk.bf16.vlgmr.msra.gmra.mrb[44].mxu1 %vm1447_vm2, %v4246_v17 }
  0xf4   :  { %3247 = vmatpush3.bf16.msra.mxu0 %v3628_v56  ;;  %3256 = vmatprep.mubr.msk.bf16.mxu0 %vm3637_vm3, %v3636_v57 }
  0xf5   :  { %3248 = vmatprep.subr.bf16.mxu0 %v3636_v57 }
  0xf8   :  { %3249 = vmatpush3.bf16.msra.mxu0 %v3629_v58 }
  0xf9   :  { %3250 = vmatprep.subr.bf16.mxu0 %v3636_v57 }
  0xfc   :  { %3251 = vmatpush3.bf16.msra.mxu0 %v3630_v59 }
  0xfd   :  { %3252 = vmatprep.subr.bf16.mxu0 %v3636_v57 }
  0xfe   :  { %v4537_v61 = vpop.f32.mrb[4].mxu0  ;;  %v4539_v62 = vpop.f32.mrb[4].mxu1 }
  0xff   :  { %v4541_v63 = vpop.f32.mrb[5].mxu0  ;;  %v4543_v0 = vpop.f32.mrb[5].mxu1 }
 0x100   :  { %v1722_v2 = vpop.f32.mrb[6].mxu0  ;;  %3253 = vmatpush3.bf16.msra.mxu0 %v3631_v30  ;;  %v1763_v4 = vpop.f32.mrb[6].mxu1 }
 0x101   :  { %v1723_v5 = vpop.f32.mrb[7].mxu0  ;;  %3254 = vmatprep.subr.bf16.mxu0 %v3636_v57  ;;  %v1764_v6 = vpop.f32.mrb[7].mxu1 }
 0x104   :  { %3255 = vmatpush3.bf16.msra.mxu0 %v1600_v3 }
 0x107   :  { %3257 = vmatmul.mubr.msk.bf16.vlgmr.msra.gmra.mrb[48].mxu0 %vm1447_vm2, %v4246_v17 }
 0x112   :  { %v4548_v7 = vpop.f32.mrb[8].mxu0  ;;  %v4550_v8 = vpop.f32.mrb[8].mxu1 }
 0x113   :  { %v4552_v9 = vpop.f32.mrb[9].mxu0  ;;  %v4554_v10 = vpop.f32.mrb[9].mxu1 }
 0x114   :  { %v1804_v11 = vpop.f32.mrb[10].mxu0  ;;  %v1845_v12 = vpop.f32.mrb[10].mxu1 }
 0x115   :  { %v1805_v13 = vpop.f32.mrb[11].mxu0  ;;  %v1846_v19 = vpop.f32.mrb[11].mxu1 }
 0x126   :  { %v4556_v14 = vpop.f32.mrb[12].mxu0  ;;  %v4558_v15 = vpop.f32.mrb[12].mxu1 }
 0x127   :  { %v4560_v16 = vpop.f32.mrb[13].mxu0  ;;  %v4562_v18 = vpop.f32.mrb[13].mxu1 }
 0x128   :  { %v1886_v17 = vpop.f32.mrb[14].mxu0  ;;  %v1927_v20 = vpop.f32.mrb[14].mxu1 }
 0x129   :  { %v1887_v21 = vpop.f32.mrb[15].mxu0  ;;  %v1928_v22 = vpop.f32.mrb[15].mxu1 }
 0x13a   :  { %v4564_v23 = vpop.f32.mrb[16].mxu0  ;;  %v4566_v24 = vpop.f32.mrb[16].mxu1 }
 0x13b   :  { %v4568_v25 = vpop.f32.mrb[17].mxu0  ;;  %v4570_v26 = vpop.f32.mrb[17].mxu1 }
 0x13c   :  { %v1968_v27 = vpop.f32.mrb[18].mxu0  ;;  %v2009_v28 = vpop.f32.mrb[18].mxu1 }
 0x13d   :  { %v1969_v29 = vpop.f32.mrb[19].mxu0  ;;  %v2010_v31 = vpop.f32.mrb[19].mxu1 }
 0x14e   :  { %v4572_v32 = vpop.f32.mrb[20].mxu0  ;;  %v4574_v33 = vpop.f32.mrb[20].mxu1 }
 0x14f   :  { %v4576_v34 = vpop.f32.mrb[21].mxu0  ;;  %v4578_v35 = vpop.f32.mrb[21].mxu1 }
 0x150   :  { %v2050_v36 = vpop.f32.mrb[22].mxu0  ;;  %v2091_v37 = vpop.f32.mrb[22].mxu1 }
 0x151   :  { %v2051_v38 = vpop.f32.mrb[23].mxu0  ;;  %v2092_v1 = vpop.f32.mrb[23].mxu1 }
 0x162   :  { %v4580_v39 = vpop.f32.mrb[24].mxu0  ;;  %v4582_v40 = vpop.f32.mrb[24].mxu1 }
 0x163   :  { %v4584_v41 = vpop.f32.mrb[25].mxu0  ;;  %v4586_v42 = vpop.f32.mrb[25].mxu1 }
 0x164   :  { %v2132_v43 = vpop.f32.mrb[26].mxu0  ;;  %v2173_v44 = vpop.f32.mrb[26].mxu1 }
 0x165   :  { %v2133_v45 = vpop.f32.mrb[27].mxu0  ;;  %v2174_v50 = vpop.f32.mrb[27].mxu1 }
 0x176   :  { %v4588_v51 = vpop.f32.mrb[28].mxu0  ;;  %v4590_v52 = vpop.f32.mrb[28].mxu1 }
 0x177   :  { %v4592_v53 = vpop.f32.mrb[29].mxu0  ;;  %v4594_v54 = vpop.f32.mrb[29].mxu1 }
 0x178   :  { %v2214_v55 = vpop.f32.mrb[30].mxu0  ;;  %v2255_v56 = vpop.f32.mrb[30].mxu1 }
 0x179   :  { %v2215_v57 = vpop.f32.mrb[31].mxu0  ;;  %v2256_v58 = vpop.f32.mrb[31].mxu1 }
 0x18a   :  { %v4596_v59 = vpop.f32.mrb[32].mxu0  ;;  %v4598_v30 = vpop.f32.mrb[32].mxu1 }
 0x18b   :  { %v4600_v60 = vpop.f32.mrb[33].mxu0  ;;  %v4602_v2 = vpop.f32.mrb[33].mxu1 }
 0x18c   :  { %v2296_v3 = vpop.f32.mrb[34].mxu0  ;;  %v2337_v4 = vpop.f32.mrb[34].mxu1 }
 0x18d   :  { %v2297_v5 = vpop.f32.mrb[35].mxu0  ;;  %v2338_v6 = vpop.f32.mrb[35].mxu1  ;;  %v2859_v3 = vld [vmem:[%s4778_s2] sm:$0x3f]  ;;  %s3639_s2 = smov 64  }
 0x19e   :  { %v4604_v11 = vpop.f32.mrb[36].mxu0  ;;  %v2415_v12 = vpop.f32.mrb[36].mxu1 }
 0x19f   :  { %2721 = vrot.lane.b32.xlu1 %v2415_v12, %s3638_s0  ;;  %2717 = vrot.lane.b32.xlu0 %v4604_v11, %s3638_s0  ;;  %v2376_v13 = vpop.f32.mrb[37].mxu0  ;;  %v2417_v19 = vpop.f32.mrb[37].mxu1 }
 0x1a0   :  { %v2378_v17 = vpop.f32.mrb[38].mxu0  ;;  %v2419_v20 = vpop.f32.mrb[38].mxu1 }
 0x1a1   :  { %v2379_v21 = vpop.f32.mrb[39].mxu0  ;;  %v2420_v22 = vpop.f32.mrb[39].mxu1 }
 0x1a3   :  { %2723 = vrot.lane.b32.xlu1 %v2417_v19, %s3638_s0  ;;  %2719 = vrot.lane.b32.xlu0 %v2376_v13, %s3638_s0 }
 0x1b2   :  { %v2456_v27 = vpop.f32.mrb[40].mxu0  ;;  %v2497_v28 = vpop.f32.mrb[40].mxu1 }
 0x1b3   :  { %2725 = vrot.lane.b32.xlu0 %v2456_v27, %s3638_s0  ;;  %v2458_v29 = vpop.f32.mrb[41].mxu0  ;;  %v2499_v31 = vpop.f32.mrb[41].mxu1 }
 0x1b4   :  { %2727 = vrot.lane.b32.xlu1 %v2458_v29, %s3638_s0  ;;  %v2460_v36 = vpop.f32.mrb[42].mxu0  ;;  %v2501_v37 = vpop.f32.mrb[42].mxu1 }
 0x1b5   :  { %v2461_v38 = vpop.f32.mrb[43].mxu0  ;;  %v2502_v1 = vpop.f32.mrb[43].mxu1 }
 0x1b7   :  { %2729 = vrot.lane.b32.xlu0 %v2497_v28, %s3638_s0 }
 0x1b8   :  { %2731 = vrot.lane.b32.xlu1 %v2499_v31, %s3638_s0 }
 0x1c6   :  { %v2538_v43 = vpop.f32.mrb[44].mxu0  ;;  %v2579_v44 = vpop.f32.mrb[44].mxu1 }
 0x1c7   :  { %2733 = vrot.lane.b32.xlu0 %v2538_v43, %s3638_s0  ;;  %v2540_v45 = vpop.f32.mrb[45].mxu0  ;;  %v2581_v50 = vpop.f32.mrb[45].mxu1 }
 0x1c8   :  { %2735 = vrot.lane.b32.xlu1 %v2540_v45, %s3638_s0  ;;  %v2542_v55 = vpop.f32.mrb[46].mxu0  ;;  %v2583_v56 = vpop.f32.mrb[46].mxu1 }
 0x1c9   :  { %v2543_v57 = vpop.f32.mrb[47].mxu0  ;;  %v2584_v58 = vpop.f32.mrb[47].mxu1 }
 0x1cb   :  { %2737 = vrot.lane.b32.xlu0 %v2579_v44, %s3638_s0 }
 0x1cc   :  { %2739 = vrot.lane.b32.xlu1 %v2581_v50, %s3638_s0 }
 0x1d0   :  { %2862 = vperm.xlu1 %3266, %v2859_v3  }
 0x1d4   :  { %2641 = vrot.lane.b32.xlu1 %v4560_v16, %s3638_s0 }
 0x1d8   :  { %2645 = vrot.lane.b32.xlu1 %v4562_v18, %s3638_s0 }
 0x1da   :  { %v2620_v4 = vpop.f32.mrb[48].mxu0 }
 0x1db   :  { %2741 = vrot.lane.b32.xlu0 %v2620_v4, %s3638_s0  ;;  %v3258_v5 = vpop.f32.mrb[49].mxu0 }
 0x1dc   :  { %2649 = vrot.lane.b32.xlu1 %v4568_v25, %s3638_s0  ;;  %v2623_v6 = vpop.f32.mrb[50].mxu0 }
 0x1dd   :  { %v3259_v12 = vpop.f32.mrb[51].mxu0 }
 0x1df   :  { %2639 = vrot.lane.b32.xlu0 %v4556_v14, %s3638_s0 }
 0x1e0   :  { %2653 = vrot.lane.b32.xlu1 %v4570_v26, %s3638_s0 }
 0x1e3   :  { %2643 = vrot.lane.b32.xlu0 %v4558_v15, %s3638_s0 }
 0x1e4   :  { %2657 = vrot.lane.b32.xlu1 %v4576_v34, %s3638_s0 }
 0x1e7   :  { %2647 = vrot.lane.b32.xlu0 %v4564_v23, %s3638_s0 }
 0x1e8   :  { %2661 = vrot.lane.b32.xlu1 %v4578_v35, %s3638_s0 }
 0x1eb   :  { %2651 = vrot.lane.b32.xlu0 %v4566_v24, %s3638_s0 }
 0x1ef   :  { %2655 = vrot.lane.b32.xlu0 %v4572_v32, %s3638_s0 }
 0x1f3   :  { %2659 = vrot.lane.b32.xlu0 %v4574_v33, %s3638_s0 }
 0x1f7   :  { %2663 = vrot.lane.b32.xlu0 %v4580_v39, %s3638_s0 }
 0x211   :  { %v2722_v15 = vpop.permute.xlu1 %2721  ;;  %v2718_v16 = vpop.permute.xlu0 %2717 }
 0x215   :  { %v2724_v18 = vpop.permute.xlu1 %2723  ;;  %v2720_v23 = vpop.permute.xlu0 %2719 }
 0x216   :  { %v2743_v25 = vsel %vm2665_vm4, %v2718_v16, %v2720_v23  ;;  %v2744_v26 = vsel %vm2665_vm4, %v2720_v23, %v2722_v15  ;;  %v2745_v32 = vsel %vm2665_vm4, %v2722_v15, %v2724_v18 }
 0x217   :  { %v2768_v24 = vmax.f32 %v4580_v39, %v2743_v25  ;;  %v2769_v34 = vmax.f32 %v4584_v41, %v2744_v26  ;;  %v2770_v33 = vmax.f32 %v4582_v40, %v2745_v32 }
 0x219   :  { %2794 = vrot.lane.b32.xlu1 %v2768_v24, %s3639_s2  ;;  %2796 = vrot.lane.b32.xlu0 %v2769_v34, %s3639_s2 }
 0x21d   :  { %2798 = vrot.lane.b32.xlu1 %v2770_v33, %s3639_s2 }
 0x225   :  { %v2726_v35 = vpop.permute.xlu0 %2725 }
 0x226   :  { %v2746_v13 = vsel %vm2665_vm4, %v2724_v18, %v2726_v35  ;;  %v2728_v19 = vpop.permute.xlu1 %2727 }
 0x227   :  { %v2771_v17 = vmax.f32 %v4586_v42, %v2746_v13  ;;  %v2747_v39 = vsel %vm2665_vm4, %v2726_v35, %v2728_v19 }
 0x228   :  { %v2772_v41 = vmax.f32 %v4588_v51, %v2747_v39 }
 0x229   :  { %v2730_v20 = vpop.permute.xlu0 %2729  ;;  %2800 = vrot.lane.b32.xlu0 %v2771_v17, %s3639_s2 }
 0x22a   :  { %v2748_v21 = vsel %vm2665_vm4, %v2728_v19, %v2730_v20  ;;  %v2732_v22 = vpop.permute.xlu1 %2731  ;;  %2802 = vrot.lane.b32.xlu1 %v2772_v41, %s3639_s2 }
 0x22b   :  { %v2773_v40 = vmax.f32 %v4592_v53, %v2748_v21  ;;  %v2749_v27 = vsel %vm2665_vm4, %v2730_v20, %v2732_v22 }
 0x22c   :  { %v2774_v28 = vmax.f32 %v4590_v52, %v2749_v27 }
 0x22d   :  { %2804 = vrot.lane.b32.xlu0 %v2773_v40, %s3639_s2 }
 0x22e   :  { %2806 = vrot.lane.b32.xlu1 %v2774_v28, %s3639_s2 }
 0x239   :  { %v2734_v42 = vpop.permute.xlu0 %2733 }
 0x23a   :  { %v2750_v51 = vsel %vm2665_vm4, %v2732_v22, %v2734_v42  ;;  %v2736_v29 = vpop.permute.xlu1 %2735 }
 0x23b   :  { %v2775_v31 = vmax.f32 %v4594_v54, %v2750_v51  ;;  %v2751_v36 = vsel %vm2665_vm4, %v2734_v42, %v2736_v29 }
 0x23c   :  { %v2776_v37 = vmax.f32 %v4596_v59, %v2751_v36 }
 0x23d   :  { %v2738_v38 = vpop.permute.xlu0 %2737  ;;  %2808 = vrot.lane.b32.xlu0 %v2775_v31, %s3639_s2 }
 0x23e   :  { %v2752_v53 = vsel %vm2665_vm4, %v2736_v29, %v2738_v38  ;;  %2810 = vrot.lane.b32.xlu1 %v2776_v37, %s3639_s2  ;;  %v2740_v52 = vpop.permute.xlu1 %2739 }
 0x23f   :  { %v2777_v1 = vmax.f32 %v4600_v60, %v2752_v53  ;;  %v2753_v43 = vsel %vm2665_vm4, %v2738_v38, %v2740_v52 }
 0x240   :  { %v2778_v44 = vmax.f32 %v4598_v30, %v2753_v43 }
 0x241   :  { %2812 = vrot.lane.b32.xlu0 %v2777_v1, %s3639_s2 }
 0x242   :  { %2814 = vrot.lane.b32.xlu1 %v2778_v44, %s3639_s2 }
 0x24d   :  { %v2742_v54 = vpop.permute.xlu0 %2741 }
 0x24e   :  { %v2754_v59 = vsel %vm2665_vm4, %v2740_v52, %v2742_v54  ;;  %v2780_v45 = vmax.f32 %v4604_v11, %v2742_v54 }
 0x24f   :  { %v2779_v50 = vmax.f32 %v4602_v2, %v2754_v59  ;;  %v4687_v60 = vpop.permute.xlu1 %2862 }
 0x250   :  { %2818 = vrot.lane.b32.xlu1 %v2780_v45, %s3639_s2 }
 0x251   :  { %2816 = vrot.lane.b32.xlu0 %v2779_v50, %s3639_s2  ;;  %v2640_v55 = vpop.permute.xlu0 %2639 }
 0x253   :  { %v2642_v56 = vpop.permute.xlu1 %2641 }
 0x254   :  { %v2666_v16 = vsel %vm2665_vm4, %v2640_v55, %v2642_v56 }
 0x255   :  { %v2644_v30 = vpop.permute.xlu0 %2643  ;;  %v2691_v18 = vmax.f32 %v4508_v46, %v2666_v16 }
 0x256   :  { %v2667_v26 = vsel %vm2665_vm4, %v2642_v56, %v2644_v30 }
 0x257   :  { %v2646_v57 = vpop.permute.xlu1 %2645  ;;  %v2692_v32 = vmax.f32 %v4512_v48, %v2667_v26 }
 0x258   :  { %v2668_v20 = vsel %vm2665_vm4, %v2644_v30, %v2646_v57 }
 0x259   :  { %v2648_v58 = vpop.permute.xlu0 %2647  ;;  %v2693_v48 = vmax.f32 %v4510_v47, %v2668_v20 }
 0x25a   :  { %v2669_v21 = vsel %vm2665_vm4, %v2646_v57, %v2648_v58 }
 0x25b   :  { %v2650_v3 = vpop.permute.xlu1 %2649  ;;  %v2694_v40 = vmax.f32 %v4514_v49, %v2669_v21 }
 0x25c   :  { %v2670_v27 = vsel %vm2665_vm4, %v2648_v58, %v2650_v3 }
 0x25d   :  { %v2652_v4 = vpop.permute.xlu0 %2651  ;;  %v2695_v37 = vmax.f32 %v4537_v61, %v2670_v27 }
 0x25e   :  { %v2671_v51 = vsel %vm2665_vm4, %v2650_v3, %v2652_v4 }
 0x25f   :  { %v2654_v5 = vpop.permute.xlu1 %2653  ;;  %v2696_v47 = vmax.f32 %v4541_v63, %v2671_v51 }
 0x260   :  { %v2672_v57 = vsel %vm2665_vm4, %v2652_v4, %v2654_v5 }
 0x261   :  { %v2656_v6 = vpop.permute.xlu0 %2655  ;;  %v2697_v3 = vmax.f32 %v4539_v62, %v2672_v57 }
 0x262   :  { %v2673_v58 = vsel %vm2665_vm4, %v2654_v5, %v2656_v6 }
 0x263   :  { %v4689_v12 = vpop.permute.xlu1 %2657 }
 0x265   :  { %v4691_v11 = vpop.permute.xlu0 %2659 }
 0x267   :  { %v4693_v2 = vpop.permute.xlu1 %2661 }
 0x269   :  { %v4695_v15 = vpop.permute.xlu0 %2663 }
 0x26a   :  { %v2703_v27 = vmax.f32 %v4556_v14, %v4695_v15 }
 0x28b   :  { %v2795_v23 = vpop.permute.xlu1 %2794  ;;  %v2797_v25 = vpop.permute.xlu0 %2796 }
 0x28c   :  { %v2821_v24 = vsel %vm2820_vm5, %v2795_v23, %v2797_v25  ;;  %v2674_v23 = vsel %vm2665_vm4, %v2656_v6, %v4689_v12 }
 0x28d   :  { %v2846_v34 = vmax.f32 %v2691_v18, %v2821_v24  ;;  %v2698_v18 = vmax.f32 %v4543_v0, %v2673_v58  ;;  %v2675_v24 = vsel %vm2665_vm4, %v4689_v12, %v4691_v11  ;;  %v2699_v5 = vmax.f32 %v4548_v7, %v2674_v23 }
 0x28e   :  { %v2700_v0 = vmax.f32 %v4552_v9, %v2675_v24 }
 0x28f   :  { %v2799_v33 = vpop.permute.xlu1 %2798  ;;  %v2865_v13 = vadd.f32 %v4687_v60, %v2846_v34 }
 0x290   :  { %v2822_v35 = vsel %vm2820_vm5, %v2797_v25, %v2799_v33 }
 0x291   :  { %v2847_v19 = vmax.f32 %v2692_v32, %v2822_v35  ;;  %v2878_v39 = vmax.f32 %v2865_v13, 0.0 }
 0x293   :  { %v2866_v17 = vadd.f32 %v4687_v60, %v2847_v19 }
 0x295   :  { %v2879_v41 = vmax.f32 %v2866_v17, 0.0 }
 0x297   :  { %v3233_v46 = vpack.c.bf16 %v2879_v41, %v2878_v39 }
 0x299   :  { %2944 = vst [vmem:[%s4779_s3] sm:$0x77] %v3233_v46 }
 0x29b   :  { %v2801_v22 = vpop.permute.xlu0 %2800 }
 0x29c   :  { %v2823_v28 = vsel %vm2820_vm5, %v2799_v33, %v2801_v22  ;;  %v2803_v42 = vpop.permute.xlu1 %2802 }
 0x29d   :  { %v2848_v29 = vmax.f32 %v2693_v48, %v2823_v28  ;;  %v2824_v31 = vsel %vm2820_vm5, %v2801_v22, %v2803_v42  ;;  %v2676_v22 = vsel %vm2665_vm4, %v4691_v11, %v4693_v2 }
 0x29e   :  { %v2849_v36 = vmax.f32 %v2694_v40, %v2824_v31  ;;  %v2677_v40 = vsel %vm2665_vm4, %v4693_v2, %v4695_v15 }
 0x29f   :  { %v2867_v38 = vadd.f32 %v4687_v60, %v2848_v29  ;;  %v2805_v53 = vpop.permute.xlu0 %2804  ;;  %v2702_v51 = vmax.f32 %v4554_v10, %v2677_v40 }
 0x2a0   :  { %v2868_v49 = vadd.f32 %v4687_v60, %v2849_v36  ;;  %v2825_v52 = vsel %vm2820_vm5, %v2803_v42, %v2805_v53  ;;  %v2807_v1 = vpop.permute.xlu1 %2806  ;;  %v2701_v42 = vmax.f32 %v4550_v8, %v2676_v22 }
 0x2a1   :  { %v2880_v43 = vmax.f32 %v2867_v38, 0.0  ;;  %v2850_v44 = vmax.f32 %v2695_v37, %v2825_v52  ;;  %v2826_v54 = vsel %vm2820_vm5, %v2805_v53, %v2807_v1 }
 0x2a2   :  { %v2881_v59 = vmax.f32 %v2868_v49, 0.0  ;;  %v2851_v45 = vmax.f32 %v2696_v47, %v2826_v54 }
 0x2a3   :  { %v2869_v50 = vadd.f32 %v4687_v60, %v2850_v44 }
 0x2a4   :  { %v3234_v55 = vpack.c.bf16 %v2881_v59, %v2880_v43  ;;  %v2870_v61 = vadd.f32 %v4687_v60, %v2851_v45 }
 0x2a5   :  { %v2882_v56 = vmax.f32 %v2869_v50, 0.0 }
 0x2a6   :  { %2945 = vst [vmem:[%s4779_s3 + $0x8] sm:$0x77] %v3234_v55  ;;  %v2883_v63 = vmax.f32 %v2870_v61, 0.0 }
 0x2a8   :  { %v3235_v30 = vpack.c.bf16 %v2883_v63, %v2882_v56 }
 0x2aa   :  { %2946 = vst [vmem:[%s4779_s3 + $0x10] sm:$0x77] %v3235_v30 }
 0x2af   :  { %v2809_v16 = vpop.permute.xlu0 %2808 }
 0x2b0   :  { %v2827_v25 = vsel %vm2820_vm5, %v2807_v1, %v2809_v16  ;;  %v2811_v26 = vpop.permute.xlu1 %2810 }
 0x2b1   :  { %v2852_v34 = vmax.f32 %v2697_v3, %v2827_v25  ;;  %v2828_v4 = vsel %vm2820_vm5, %v2809_v16, %v2811_v26 }
 0x2b2   :  { %v2853_v32 = vmax.f32 %v2698_v18, %v2828_v4 }
 0x2b3   :  { %v2871_v62 = vadd.f32 %v4687_v60, %v2852_v34  ;;  %v2813_v33 = vpop.permute.xlu0 %2812 }
 0x2b4   :  { %v2872_v6 = vadd.f32 %v4687_v60, %v2853_v32  ;;  %v2829_v35 = vsel %vm2820_vm5, %v2811_v26, %v2813_v33  ;;  %v2815_v13 = vpop.permute.xlu1 %2814 }
 0x2b5   :  { %v2884_v19 = vmax.f32 %v2871_v62, 0.0  ;;  %v2854_v17 = vmax.f32 %v2699_v5, %v2829_v35  ;;  %v2830_v12 = vsel %vm2820_vm5, %v2813_v33, %v2815_v13 }
 0x2b6   :  { %v2885_v39 = vmax.f32 %v2872_v6, 0.0  ;;  %v2855_v41 = vmax.f32 %v2700_v0, %v2830_v12 }
 0x2b7   :  { %v2873_v46 = vadd.f32 %v4687_v60, %v2854_v17 }
 0x2b8   :  { %v3236_v20 = vpack.c.bf16 %v2885_v39, %v2884_v19  ;;  %v2874_v7 = vadd.f32 %v4687_v60, %v2855_v41 }
 0x2b9   :  { %v2886_v21 = vmax.f32 %v2873_v46, 0.0 }
 0x2ba   :  { %2947 = vst [vmem:[%s4779_s3 + $0x18] sm:$0x77] %v3236_v20  ;;  %v2887_v9 = vmax.f32 %v2874_v7, 0.0 }
 0x2bc   :  { %v3237_v48 = vpack.c.bf16 %v2887_v9, %v2886_v21 }
 0x2be   :  { %2948 = vst [vmem:[%s4779_s3 + $0x20] sm:$0x77] %v3237_v48 }
 0x2c2   :  { %v2819_v28 = vpop.permute.xlu1 %2818 }
 0x2c3   :  { %v2858_v29 = vmax.f32 %v2703_v27, %v2819_v28  ;;  %v2817_v31 = vpop.permute.xlu0 %2816 }
 0x2c4   :  { %v2831_v36 = vsel %vm2820_vm5, %v2815_v13, %v2817_v31  ;;  %v2832_v37 = vsel %vm2820_vm5, %v2817_v31, %v2819_v28 }
 0x2c5   :  { %v2877_v11 = vadd.f32 %v4687_v60, %v2858_v29  ;;  %v2856_v38 = vmax.f32 %v2701_v42, %v2831_v36  ;;  %v2857_v53 = vmax.f32 %v2702_v51, %v2832_v37 }
 0x2c7   :  { %v2890_v47 = vmax.f32 %v2877_v11, 0.0  ;;  %v2875_v2 = vadd.f32 %v4687_v60, %v2856_v38  ;;  %v2876_v14 = vadd.f32 %v4687_v60, %v2857_v53 }
 0x2c9   :  { %v3239_v15 = vpack.c.bf16 %v2890_v47, %v2890_v47  ;;  %v2888_v8 = vmax.f32 %v2875_v2, 0.0  ;;  %v2889_v49 = vmax.f32 %v2876_v14, 0.0 }
 0x2cb   :  { %2951 = vst.msk [vmem:[%s4779_s3 + $0x30] sm:$0x7] %vm2950_vm6, %v3239_v15  ;;  %v3238_v10 = vpack.c.bf16 %v2889_v49, %v2888_v8 }
 0x2cd   :  { %2949 = vst [vmem:[%s4779_s3 + $0x28] sm:$0x77] %v3238_v10 }

// kernel: net_forward.4
= control target key start
LH: loop header
LB: loop body
LE: loop exit
PB: predicated region body
PF: predicated region fallthrough
CT: control target
= control target key end

     0   :  { %v953_v1 = vmov 0   ;;  %vm444_vm0 = vcmask 179200   ;;  %vm448_vm1 = vcmask 1042432   ;;  %vm658_vm2 = vcmask 457728   ;;  %s1246_s0 = inlined_call_operand.vmem [shape: bf16[1,150,800], index: 0, kind: input, shape index: {}]   ;;  %s1247_s1 = inlined_call_operand.vmem [shape: bf16[16,150], index: 1, kind: input, shape index: {}]   ;;  %s1248_s2 = inlined_call_operand.vmem [shape: f32[16,1], index: 2, kind: input, shape index: {}]   ;;  %s1249_s3 = inlined_call_operand.vmem [shape: bf16[1,16,200], index: 3, kind: output, shape index: {}]  }
   0x1   :  { %v853_v0 = vld [vmem:[%s1246_s0 + $0x4] ss:$28 sps:$4 sm:$0xff]   ;;  %852 = vset.pattern.permute.xlu1 %v953_v1  ;;  %851 = vset.pattern.permute.xlu0 %v953_v1  ;;  %v855_v2 = vld [vmem:[%s1246_s0 + $0xc] ss:$28 sps:$4 sm:$0xff]   ;;  %v859_v5 = vld [vmem:[%s1246_s0 + $0x3c] ss:$28 sps:$4 sm:$0xff]  }
   0x2   :  { %470 = vmatprep.subr.bf16.mxu0 %v853_v0  ;;  %v857_v3 = vld [vmem:[%s1246_s0] ss:$28 sps:$4 sm:$0xff]   ;;  %v858_v4 = vld [vmem:[%s1246_s0 + $0x8] ss:$28 sps:$4 sm:$0xff]   ;;  %513 = vmatprep.subr.bf16.mxu1 %v855_v2  ;;  %v863_v7 = vld [vmem:[%s1246_s0 + $0x38] ss:$28 sps:$4 sm:$0xff]  }
   0x3   :  { %471 = vmatpush1.bf16.msra.mxu0 %v857_v3  ;;  %514 = vmatpush1.bf16.msra.mxu1 %v858_v4  ;;  %v861_v6 = vld [vmem:[%s1246_s0 + $0x44] ss:$28 sps:$4 sm:$0xff]   ;;  %v865_v9 = vld [vmem:[%s1246_s0 + $0x74] ss:$28 sps:$4 sm:$0xff]   ;;  %v867_v10 = vld [vmem:[%s1246_s0 + $0x7c] ss:$28 sps:$4 sm:$0xff]  }
   0x4   :  { %472 = vmatprep.subr.bf16.mxu0 %v859_v5  ;;  %v864_v8 = vld [vmem:[%s1246_s0 + $0x40] ss:$28 sps:$4 sm:$0xff]   ;;  %515 = vmatprep.subr.bf16.mxu1 %v861_v6  ;;  %v869_v11 = vld [vmem:[%s1246_s0 + $0x70] ss:$28 sps:$4 sm:$0xff]   ;;  %v870_v12 = vld [vmem:[%s1246_s0 + $0x78] ss:$28 sps:$4 sm:$0xff]  }
   0x5   :  { %v871_v13 = vld [vmem:[%s1246_s0 + $0xac] ss:$28 sps:$4 sm:$0xff]   ;;  %v873_v14 = vld [vmem:[%s1246_s0 + $0xb4] ss:$28 sps:$4 sm:$0xff]   ;;  %v877_v17 = vld [vmem:[%s1246_s0 + $0xe4] ss:$28 sps:$4 sm:$0xff]  }
   0x6   :  { %v875_v15 = vld [vmem:[%s1246_s0 + $0xa8] ss:$28 sps:$4 sm:$0xff]   ;;  %v876_v16 = vld [vmem:[%s1246_s0 + $0xb0] ss:$28 sps:$4 sm:$0xff]   ;;  %v881_v19 = vld [vmem:[%s1246_s0 + $0xe0] ss:$28 sps:$4 sm:$0xff]  }
   0x7   :  { %473 = vmatpush1.bf16.msra.mxu0 %v863_v7  ;;  %516 = vmatpush1.bf16.msra.mxu1 %v864_v8  ;;  %v879_v18 = vld [vmem:[%s1246_s0 + $0xec] ss:$28 sps:$4 sm:$0xff]   ;;  %v883_v21 = vld [vmem:[%s1246_s0 + $0x11c] ss:$28 sps:$4 sm:$0xff]   ;;  %v885_v22 = vld [vmem:[%s1246_s0 + $0x124] ss:$28 sps:$4 sm:$0xff]  }
   0x8   :  { %474 = vmatprep.subr.bf16.mxu0 %v865_v9  ;;  %517 = vmatprep.subr.bf16.mxu1 %v867_v10  ;;  %v882_v20 = vld [vmem:[%s1246_s0 + $0xe8] ss:$28 sps:$4 sm:$0xff]   ;;  %v887_v23 = vld [vmem:[%s1246_s0 + $0x118] ss:$28 sps:$4 sm:$0xff]   ;;  %v888_v24 = vld [vmem:[%s1246_s0 + $0x120] ss:$28 sps:$4 sm:$0xff]  }
   0x9   :  { %v889_v25 = vld [vmem:[%s1246_s0 + $0x154] ss:$28 sps:$4 sm:$0xff]   ;;  %v891_v26 = vld [vmem:[%s1246_s0 + $0x15c] ss:$28 sps:$4 sm:$0xff]   ;;  %v895_v29 = vld [vmem:[%s1246_s0 + $0x18c] ss:$28 sps:$4 sm:$0xff]  }
   0xa   :  { %v893_v27 = vld [vmem:[%s1246_s0 + $0x150] ss:$28 sps:$4 sm:$0xff]   ;;  %v894_v28 = vld [vmem:[%s1246_s0 + $0x158] ss:$28 sps:$4 sm:$0xff]   ;;  %v899_v32 = vld [vmem:[%s1246_s0 + $0x188] ss:$28 sps:$4 sm:$0xff]  }
   0xb   :  { %475 = vmatpush1.bf16.msra.mxu0 %v869_v11  ;;  %518 = vmatpush1.bf16.msra.mxu1 %v870_v12  ;;  %v897_v30 = vld [vmem:[%s1246_s0 + $0x194] ss:$28 sps:$4 sm:$0xff]   ;;  %v911_v31 = vld [vmem:[%s1247_s1 + $0x4] ss:$8 sps:$4 sm:$0xff]   ;;  %v89_v36 = vld [vmem:[%s1246_s0 + $0x1f8] sm:$0x77] }
   0xc   :  { %476 = vmatprep.subr.bf16.mxu0 %v871_v13  ;;  %519 = vmatprep.subr.bf16.mxu1 %v873_v14  ;;  %v900_v33 = vld [vmem:[%s1246_s0 + $0x190] ss:$28 sps:$4 sm:$0xff]   ;;  %v901_v34 = vld [vmem:[%s1246_s0 + $0x1c4] ss:$28 sps:$4 sm:$0xff]   ;;  %v830_v40 = vcombine.low %v89_v36, %v89_v36  ;;  %v831_v41 = vcombine.high %v89_v36, %v89_v36  ;;  %v917_v49 = vld [vmem:[%s1246_s0 + $0x18] ss:$28 sps:$4 sm:$0xff]  }
   0xd   :  { %838 = vmatprep.mubr.msk.bf16.mxu0 %vm444_vm0, %v911_v31  ;;  %840 = vmatprep.mubr.msk.bf16.mxu1 %vm444_vm0, %v911_v31  ;;  %v903_v35 = vld [vmem:[%s1246_s0 + $0x1cc] ss:$28 sps:$4 sm:$0xff]   ;;  %v90_v37 = vld [vmem:[%s1246_s0 + $0x200] sm:$0x77]  ;;  %v916_v46 = vld [vmem:[%s1246_s0 + $0x14] ss:$28 sps:$4 sm:$0xff]  }
   0xe   :  { %v905_v38 = vld [vmem:[%s1246_s0 + $0x1c0] ss:$28 sps:$4 sm:$0xff]   ;;  %v906_v39 = vld [vmem:[%s1246_s0 + $0x1c8] ss:$28 sps:$4 sm:$0xff]   ;;  %v833_v42 = vcombine.high %v90_v37, %v90_v37  ;;  %v832_v43 = vcombine.low %v90_v37, %v90_v37  ;;  %v450_v44 = vsel %vm448_vm1, %v830_v40, 0  ;;  %vm713_vm3 = vcmask 916480  }
   0xf   :  { %477 = vmatpush1.bf16.msra.mxu0 %v875_v15  ;;  %520 = vmatpush1.bf16.msra.mxu1 %v876_v16  ;;  %v1107_v47 = vld [vmem:[%s1247_s1] ss:$8 sps:$4 sm:$0xff]   ;;  %v914_v48 = vld [vmem:[%s1246_s0 + $0x10] ss:$28 sps:$4 sm:$0xff]   ;;  %v928_v56 = vld [vmem:[%s1246_s0 + $0xbc] ss:$28 sps:$4 sm:$0xff]  }
  0x10   :  { %478 = vmatprep.subr.bf16.mxu0 %v877_v17  ;;  %521 = vmatprep.subr.bf16.mxu1 %v879_v18  ;;  %v456_v45 = vsel %vm448_vm1, %v832_v43, 0  ;;  %v920_v50 = vld [vmem:[%s1246_s0 + $0x4c] ss:$28 sps:$4 sm:$0xff]   ;;  %v924_v53 = vld [vmem:[%s1246_s0 + $0x84] ss:$28 sps:$4 sm:$0xff]   ;;  %vm756_vm4 = vcmask 1043456  }
  0x11   :  { %v918_v51 = vld [vmem:[%s1246_s0 + $0x48] ss:$28 sps:$4 sm:$0xff]   ;;  %v921_v52 = vld [vmem:[%s1246_s0 + $0x50] ss:$28 sps:$4 sm:$0xff]   ;;  %v922_v54 = vld [vmem:[%s1246_s0 + $0x80] ss:$28 sps:$4 sm:$0xff]  }
  0x12   :  { %v925_v55 = vld [vmem:[%s1246_s0 + $0x88] ss:$28 sps:$4 sm:$0xff]   ;;  %v926_v57 = vld [vmem:[%s1246_s0 + $0xb8] ss:$28 sps:$4 sm:$0xff]   ;;  %v929_v58 = vld [vmem:[%s1246_s0 + $0xc0] ss:$28 sps:$4 sm:$0xff]  }
  0x13   :  { %479 = vmatpush1.bf16.msra.mxu0 %v881_v19  ;;  %522 = vmatpush1.bf16.msra.mxu1 %v882_v20  ;;  %v932_v59 = vld [vmem:[%s1246_s0 + $0xf4] ss:$28 sps:$4 sm:$0xff]   ;;  %v936_v62 = vld [vmem:[%s1246_s0 + $0x12c] ss:$28 sps:$4 sm:$0xff]   ;;  %v940_v2 = vld [vmem:[%s1246_s0 + $0x164] ss:$28 sps:$4 sm:$0xff]  }
  0x14   :  { %480 = vmatprep.subr.bf16.mxu0 %v883_v21  ;;  %523 = vmatprep.subr.bf16.mxu1 %v885_v22  ;;  %v930_v60 = vld [vmem:[%s1246_s0 + $0xf0] ss:$28 sps:$4 sm:$0xff]   ;;  %v933_v61 = vld [vmem:[%s1246_s0 + $0xf8] ss:$28 sps:$4 sm:$0xff]   ;;  %v934_v63 = vld [vmem:[%s1246_s0 + $0x128] ss:$28 sps:$4 sm:$0xff]  }
  0x15   :  { %v937_v0 = vld [vmem:[%s1246_s0 + $0x130] ss:$28 sps:$4 sm:$0xff]   ;;  %v938_v3 = vld [vmem:[%s1246_s0 + $0x160] ss:$28 sps:$4 sm:$0xff]   ;;  %v941_v4 = vld [vmem:[%s1246_s0 + $0x168] ss:$28 sps:$4 sm:$0xff]  }
  0x16   :  { %v944_v5 = vld [vmem:[%s1246_s0 + $0x19c] ss:$28 sps:$4 sm:$0xff]   ;;  %v948_v8 = vld [vmem:[%s1246_s0 + $0x1d4] ss:$28 sps:$4 sm:$0xff]   ;;  %v91_v9 = vld [vmem:[%s1246_s0 + $0x208] sm:$0x77] }
  0x17   :  { %481 = vmatpush1.bf16.msra.mxu0 %v887_v23  ;;  %524 = vmatpush1.bf16.msra.mxu1 %v888_v24  ;;  %v942_v6 = vld [vmem:[%s1246_s0 + $0x198] ss:$28 sps:$4 sm:$0xff]   ;;  %v945_v7 = vld [vmem:[%s1246_s0 + $0x1a0] ss:$28 sps:$4 sm:$0xff]   ;;  %v946_v10 = vld [vmem:[%s1246_s0 + $0x1d0] ss:$28 sps:$4 sm:$0xff]   ;;  %v835_v12 = vcombine.high %v91_v9, %v91_v9  ;;  %v834_v13 = vcombine.low %v91_v9, %v91_v9 }
  0x18   :  { %482 = vmatprep.subr.bf16.mxu0 %v889_v25  ;;  %525 = vmatprep.subr.bf16.mxu1 %v891_v26  ;;  %v949_v11 = vld [vmem:[%s1246_s0 + $0x1d8] ss:$28 sps:$4 sm:$0xff]   ;;  %v952_v14 = vld [vmem:[%s1246_s0 + $0x210] ss:$0 sps:$4 sm:$0x77]   ;;  %s954_s0 = smov 56  }
  0x19   :  { %v462_v15 = vsel %vm448_vm1, %v834_v13, 0  ;;  %v468_v16 = vsel %vm448_vm1, %v952_v14, 0  ;;  %vm757_vm5 = vcmask 588804  }
  0x1a   :  { %vm758_vm6 = vmor %vm757_vm5, %vm756_vm4 }
  0x1b   :  { %483 = vmatpush1.bf16.msra.mxu0 %v893_v27  ;;  %526 = vmatpush1.bf16.msra.mxu1 %v894_v28 }
  0x1c   :  { %484 = vmatprep.subr.bf16.mxu0 %v895_v29  ;;  %527 = vmatprep.subr.bf16.mxu1 %v897_v30 }
  0x1f   :  { %485 = vmatpush1.bf16.msra.mxu0 %v899_v32  ;;  %528 = vmatpush1.bf16.msra.mxu1 %v900_v33  ;;  %v725_v32 = vld [vmem:[%s1248_s2 + $0x8] sm:$0xff]  ;;  %v724_v33 = vld [vmem:[%s1248_s2] sm:$0xff]  ;;  %s955_s2 = smov 112  }
  0x20   :  { %486 = vmatprep.subr.bf16.mxu0 %v901_v34  ;;  %529 = vmatprep.subr.bf16.mxu1 %v903_v35 }
  0x23   :  { %487 = vmatpush1.bf16.msra.mxu0 %v905_v38  ;;  %530 = vmatpush1.bf16.msra.mxu1 %v906_v39 }
  0x24   :  { %837 = vmatprep.subr.msk.bf16.mxu0 %vm448_vm1, %v831_v41  ;;  %839 = vmatprep.subr.msk.bf16.mxu1 %vm448_vm1, %v833_v42 }
  0x27   :  { %489 = vmatpush1.bf16.msra.mxu0 %v450_v44  ;;  %532 = vmatpush1.bf16.msra.mxu1 %v456_v45 }
  0x28   :  { %556 = vmatprep.subr.bf16.mxu0 %v916_v46  ;;  %599 = vmatprep.subr.bf16.mxu1 %v953_v1 }
  0x2a   :  { %503 = vmatmul.mubr.bf16.vlgmr.msra.gmra.mrb[0].mxu0 %v1107_v47  ;;  %546 = vmatmul.mubr.bf16.vlgmr.msra.gmra.mrb[0].mxu1 %v1107_v47 }
  0x2b   :  { %557 = vmatpush1.bf16.msra.mxu0 %v914_v48  ;;  %600 = vmatpush1.bf16.msra.mxu1 %v917_v49 }
  0x2c   :  { %558 = vmatprep.subr.bf16.mxu0 %v920_v50  ;;  %601 = vmatprep.subr.bf16.mxu1 %v953_v1 }
  0x2d   :  { %842 = vmatprep.mubr.msk.bf16.mxu0 %vm444_vm0, %v911_v31  ;;  %843 = vmatprep.mubr.msk.bf16.mxu1 %vm444_vm0, %v911_v31 }
  0x2f   :  { %559 = vmatpush1.bf16.msra.mxu0 %v918_v51  ;;  %602 = vmatpush1.bf16.msra.mxu1 %v921_v52 }
  0x30   :  { %560 = vmatprep.subr.bf16.mxu0 %v924_v53  ;;  %603 = vmatprep.subr.bf16.mxu1 %v953_v1 }
  0x33   :  { %561 = vmatpush1.bf16.msra.mxu0 %v922_v54  ;;  %604 = vmatpush1.bf16.msra.mxu1 %v925_v55 }
  0x34   :  { %562 = vmatprep.subr.bf16.mxu0 %v928_v56  ;;  %605 = vmatprep.subr.bf16.mxu1 %v953_v1 }
  0x37   :  { %563 = vmatpush1.bf16.msra.mxu0 %v926_v57  ;;  %606 = vmatpush1.bf16.msra.mxu1 %v929_v58 }
  0x38   :  { %564 = vmatprep.subr.bf16.mxu0 %v932_v59  ;;  %607 = vmatprep.subr.bf16.mxu1 %v953_v1 }
  0x3b   :  { %565 = vmatpush1.bf16.msra.mxu0 %v930_v60  ;;  %608 = vmatpush1.bf16.msra.mxu1 %v933_v61 }
  0x3c   :  { %566 = vmatprep.subr.bf16.mxu0 %v936_v62  ;;  %609 = vmatprep.subr.bf16.mxu1 %v953_v1 }
  0x3f   :  { %567 = vmatpush1.bf16.msra.mxu0 %v934_v63  ;;  %610 = vmatpush1.bf16.msra.mxu1 %v937_v0 }
  0x40   :  { %568 = vmatprep.subr.bf16.mxu0 %v940_v2  ;;  %611 = vmatprep.subr.bf16.mxu1 %v953_v1 }
  0x43   :  { %569 = vmatpush1.bf16.msra.mxu0 %v938_v3  ;;  %612 = vmatpush1.bf16.msra.mxu1 %v941_v4 }
  0x44   :  { %570 = vmatprep.subr.bf16.mxu0 %v944_v5  ;;  %613 = vmatprep.subr.bf16.mxu1 %v953_v1 }
  0x47   :  { %571 = vmatpush1.bf16.msra.mxu0 %v942_v6  ;;  %614 = vmatpush1.bf16.msra.mxu1 %v945_v7 }
  0x48   :  { %572 = vmatprep.subr.bf16.mxu0 %v948_v8  ;;  %615 = vmatprep.subr.bf16.mxu1 %v953_v1 }
  0x4b   :  { %573 = vmatpush1.bf16.msra.mxu0 %v946_v10  ;;  %616 = vmatpush1.bf16.msra.mxu1 %v949_v11 }
  0x4c   :  { %841 = vmatprep.subr.msk.bf16.mxu0 %vm448_vm1, %v835_v12  ;;  %617 = vmatprep.subr.bf16.mxu1 %v953_v1 }
  0x4f   :  { %575 = vmatpush1.bf16.msra.mxu0 %v462_v15  ;;  %618 = vmatpush1.bf16.msra.mxu1 %v468_v16 }
  0x52   :  { %589 = vmatmul.mubr.bf16.vlgmr.msra.gmra.mrb[4].mxu0 %v1107_v47  ;;  %632 = vmatmul.mubr.bf16.vlgmr.msra.gmra.mrb[4].mxu1 %v1107_v47 }
  0xfd   :  { %v1212_v17 = vpop.f32.mrb[0].mxu0  ;;  %v547_v18 = vpop.f32.mrb[0].mxu1 }
  0xfe   :  { %v1214_v19 = vpop.f32.mrb[1].mxu0  ;;  %v549_v20 = vpop.f32.mrb[1].mxu1 }
  0xff   :  { %v1216_v21 = vpop.f32.mrb[2].mxu0  ;;  %v551_v22 = vpop.f32.mrb[2].mxu1 }
 0x100   :  { %v1218_v1 = vpop.f32.mrb[3].mxu0  ;;  %v553_v23 = vpop.f32.mrb[3].mxu1 }
 0x125   :  { %v590_v24 = vpop.f32.mrb[4].mxu0  ;;  %v633_v25 = vpop.f32.mrb[4].mxu1 }
 0x126   :  { %681 = vrot.lane.b32.xlu1 %v633_v25, %s954_s0  ;;  %v635_v26 = vpop.f32.mrb[5].mxu1  ;;  %677 = vrot.lane.b32.xlu0 %v590_v24, %s954_s0  ;;  %v592_v27 = vpop.f32.mrb[5].mxu0 }
 0x127   :  { %v594_v28 = vpop.f32.mrb[6].mxu0  ;;  %v636_v29 = vpop.f32.mrb[6].mxu1 }
 0x128   :  { %v596_v30 = vpop.f32.mrb[7].mxu0  ;;  %v638_v31 = vpop.f32.mrb[7].mxu1 }
 0x12a   :  { %679 = vrot.lane.b32.xlu0 %v592_v27, %s954_s0  ;;  %683 = vrot.lane.b32.xlu1 %v594_v28, %s954_s0 }
 0x12e   :  { %687 = vrot.lane.b32.xlu1 %v636_v29, %s954_s0  ;;  %685 = vrot.lane.b32.xlu0 %v596_v30, %s954_s0 }
 0x132   :  { %733 = vperm.xlu1 %852, %v725_v32   ;;  %728 = vperm.xlu0 %851, %v724_v33  }
 0x136   :  { %646 = vrot.lane.b32.xlu1 %v1214_v19, %s954_s0  ;;  %648 = vrot.lane.b32.xlu0 %v547_v18, %s954_s0 }
 0x13a   :  { %650 = vrot.lane.b32.xlu1 %v549_v20, %s954_s0  ;;  %652 = vrot.lane.b32.xlu0 %v1218_v1, %s954_s0 }
 0x13e   :  { %654 = vrot.lane.b32.xlu1 %v551_v22, %s954_s0  ;;  %656 = vrot.lane.b32.xlu0 %v553_v23, %s954_s0 }
 0x198   :  { %v682_v34 = vpop.permute.xlu1 %681  ;;  %v678_v35 = vpop.permute.xlu0 %677 }
 0x19c   :  { %v680_v36 = vpop.permute.xlu0 %679  ;;  %v684_v37 = vpop.permute.xlu1 %683 }
 0x19d   :  { %v689_v38 = vsel %vm658_vm2, %v678_v35, %v680_v36  ;;  %v690_v39 = vsel %vm658_vm2, %v680_v36, %v682_v34 }
 0x19e   :  { %v697_v40 = vmax.f32 %v549_v20, %v689_v38  ;;  %v698_v41 = vmax.f32 %v590_v24, %v690_v39 }
 0x1a0   :  { %705 = vrot.lane.b32.xlu1 %v697_v40, %s955_s2  ;;  %v688_v42 = vpop.permute.xlu1 %687  ;;  %707 = vrot.lane.b32.xlu0 %v698_v41, %s955_s2  ;;  %v686_v43 = vpop.permute.xlu0 %685 }
 0x1a1   :  { %v691_v44 = vsel %vm658_vm2, %v684_v37, %v686_v43  ;;  %v692_v45 = vsel %vm658_vm2, %v686_v43, %v688_v42 }
 0x1a2   :  { %v699_v46 = vmax.f32 %v553_v23, %v691_v44  ;;  %v700_v47 = vmax.f32 %v594_v28, %v692_v45 }
 0x1a4   :  { %711 = vrot.lane.b32.xlu0 %v700_v47, %s955_s2  ;;  %709 = vrot.lane.b32.xlu1 %v699_v46, %s955_s2 }
 0x1b1   :  { %v734_v48 = vpop.permute.xlu1 %733  ;;  %v729_v49 = vpop.permute.xlu0 %728 }
 0x1b5   :  { %v647_v50 = vpop.permute.xlu1 %646  ;;  %v649_v51 = vpop.permute.xlu0 %648 }
 0x1b6   :  { %v659_v52 = vsel %vm658_vm2, %v647_v50, %v649_v51 }
 0x1b7   :  { %v667_v53 = vmax.f32 %v1212_v17, %v659_v52 }
 0x1b9   :  { %v651_v54 = vpop.permute.xlu1 %650  ;;  %v653_v55 = vpop.permute.xlu0 %652 }
 0x1ba   :  { %v660_v56 = vsel %vm658_vm2, %v649_v51, %v651_v54 }
 0x1bb   :  { %v668_v57 = vmax.f32 %v1214_v19, %v660_v56 }
 0x1bd   :  { %v655_v58 = vpop.permute.xlu1 %654  ;;  %v657_v59 = vpop.permute.xlu0 %656 }
 0x1be   :  { %v661_v60 = vsel %vm658_vm2, %v653_v55, %v655_v58  ;;  %v662_v61 = vsel %vm658_vm2, %v655_v58, %v657_v59 }
 0x1bf   :  { %v669_v62 = vmax.f32 %v1216_v21, %v661_v60  ;;  %v670_v63 = vmax.f32 %v1218_v1, %v662_v61 }
 0x212   :  { %v706_v0 = vpop.permute.xlu1 %705  ;;  %v708_v2 = vpop.permute.xlu0 %707 }
 0x213   :  { %v714_v3 = vsel %vm713_vm3, %v706_v0, %v708_v2  ;;  %v721_v4 = vmax.f32 %v668_v57, %v708_v2 }
 0x214   :  { %v720_v5 = vmax.f32 %v667_v53, %v714_v3 }
 0x215   :  { %v737_v6 = vadd.f32 %v729_v49, %v721_v4 }
 0x216   :  { %v736_v7 = vadd.f32 %v729_v49, %v720_v5  ;;  %v710_v8 = vpop.permute.xlu1 %709  ;;  %v712_v9 = vpop.permute.xlu0 %711 }
 0x217   :  { %v741_v10 = vmax.f32 %v737_v6, 0.0  ;;  %v715_v11 = vsel %vm713_vm3, %v710_v8, %v712_v9  ;;  %v723_v12 = vmax.f32 %v670_v63, %v712_v9 }
 0x218   :  { %v740_v13 = vmax.f32 %v736_v7, 0.0  ;;  %v722_v14 = vmax.f32 %v669_v62, %v715_v11 }
 0x219   :  { %v739_v15 = vadd.f32 %v734_v48, %v723_v12 }
 0x21a   :  { %v846_v16 = vpack.c.bf16 %v741_v10, %v740_v13  ;;  %v738_v17 = vadd.f32 %v734_v48, %v722_v14 }
 0x21b   :  { %v743_v18 = vmax.f32 %v739_v15, 0.0 }
 0x21c   :  { %759 = vst.msk [vmem:[%s1249_s3] sm:$0xff] %vm758_vm6, %v846_v16  ;;  %v742_v19 = vmax.f32 %v738_v17, 0.0 }
 0x21e   :  { %v847_v20 = vpack.c.bf16 %v743_v18, %v742_v19 }
 0x220   :  { %760 = vst.msk [vmem:[%s1249_s3 + $0x8] sm:$0xff] %vm758_vm6, %v847_v20 }

// kernel: net_forward.5
= control target key start
LH: loop header
LB: loop body
LE: loop exit
PB: predicated region body
PF: predicated region fallthrough
CT: control target
= control target key end

     0   :  { %v741_v0 = vmov 0   ;;  %vm249_vm0 = vcmask 130048   ;;  %v742_v32 = vmov 0.0   ;;  %vm743_vm1 = vmmov 0   ;;  %s952_s1 = inlined_call_operand.vmem [shape: bf16[400,128], index: 1, kind: input, shape index: {}]   ;;  %s953_s0 = inlined_call_operand.vmem [shape: bf16[8,400], index: 0, kind: input, shape index: {}]   ;;  %s954_s3 = inlined_call_operand.vmem [shape: bf16[128,128], index: 3, kind: input, shape index: {}]   ;;  %s955_s5 = inlined_call_operand.vmem [shape: bf16[128,128], index: 5, kind: input, shape index: {}]   ;;  %s956_s2 = inlined_call_operand.vmem [shape: f32[1,128], index: 2, kind: input, shape index: {}]   ;;  %s957_s4 = inlined_call_operand.vmem [shape: f32[1,128], index: 4, kind: input, shape index: {}]   ;;  %s958_s6 = inlined_call_operand.vmem [shape: f32[1,128], index: 6, kind: input, shape index: {}]   ;;  %s959_s7 = inlined_call_operand.vmem [shape: f32[8,128], index: 7, kind: output, shape index: {}]  }
   0x1   :  { %293 = vmatprep.subr.bf16.mxu1 %v741_v0  ;;  %v696_v1 = vld [vmem:[%s952_s1 + $0x40] sm:$0xff]   ;;  %v699_v4 = vld [vmem:[%s952_s1 + $0x48] sm:$0xff]   ;;  %v702_v7 = vld [vmem:[%s952_s1 + $0x50] sm:$0xff]  }
   0x2   :  { %v697_v2 = vld [vmem:[%s952_s1 + $0x80] sm:$0xff]   ;;  %613 = vmatprep.subr.bf16.mxu0 %v696_v1  ;;  %v700_v5 = vld [vmem:[%s952_s1 + $0x88] sm:$0xff]   ;;  %v703_v8 = vld [vmem:[%s952_s1 + $0x90] sm:$0xff]  }
   0x3   :  { %v698_v3 = vld [vmem:[%s952_s1] sm:$0xff]   ;;  %294 = vmatpush1.bf16.msra.mxu1 %v697_v2  ;;  %v701_v6 = vld [vmem:[%s952_s1 + $0x8] sm:$0xff]   ;;  %v704_v9 = vld [vmem:[%s952_s1 + $0x10] sm:$0xff]  }
   0x4   :  { %614 = vmatpush3.bf16.msra.mxu0 %v698_v3  ;;  %295 = vmatprep.subr.bf16.mxu1 %v741_v0  ;;  %v705_v10 = vld [vmem:[%s952_s1 + $0x58] sm:$0xff]   ;;  %v708_v13 = vld [vmem:[%s952_s1 + $0x60] sm:$0xff]   ;;  %v711_v16 = vld [vmem:[%s952_s1 + $0x68] sm:$0xff]  }
   0x5   :  { %615 = vmatprep.subr.bf16.mxu0 %v699_v4  ;;  %v706_v11 = vld [vmem:[%s952_s1 + $0x98] sm:$0xff]   ;;  %v709_v14 = vld [vmem:[%s952_s1 + $0xa0] sm:$0xff]   ;;  %v712_v17 = vld [vmem:[%s952_s1 + $0xa8] sm:$0xff]  }
   0x6   :  { %v707_v12 = vld [vmem:[%s952_s1 + $0x18] sm:$0xff]   ;;  %v710_v15 = vld [vmem:[%s952_s1 + $0x20] sm:$0xff]   ;;  %v713_v18 = vld [vmem:[%s952_s1 + $0x28] sm:$0xff]  }
   0x7   :  { %296 = vmatpush1.bf16.msra.mxu1 %v700_v5  ;;  %v714_v19 = vld [vmem:[%s952_s1 + $0x70] sm:$0xff]   ;;  %v27_v22 = vld [vmem:[%s953_s0] sm:$0xff]  ;;  %v717_v23 = vld [vmem:[%s952_s1 + $0x78] sm:$0xff]  }
   0x8   :  { %616 = vmatpush3.bf16.msra.mxu0 %v701_v6  ;;  %297 = vmatprep.subr.bf16.mxu1 %v741_v0  ;;  %v715_v20 = vld [vmem:[%s952_s1 + $0xb0] sm:$0xff]   ;;  %v566_v24 = vcombine.high %v27_v22, %v27_v22  ;;  %v28_v25 = vld [vmem:[%s953_s0 + $0x8] sm:$0xff]  ;;  %v718_v27 = vld [vmem:[%s952_s1 + $0xb8] sm:$0xff]   ;;  %v565_v30 = vcombine.low %v27_v22, %v27_v22 }
   0x9   :  { %617 = vmatprep.subr.bf16.mxu0 %v702_v7  ;;  %v716_v21 = vld [vmem:[%s952_s1 + $0x30] sm:$0xff]   ;;  %v568_v26 = vcombine.high %v28_v25, %v28_v25  ;;  %v719_v28 = vld [vmem:[%s952_s1 + $0x38] sm:$0xff]   ;;  %v722_v29 = vld [vmem:[%s952_s1 + $0xc0] sm:$0xff]   ;;  %v567_v33 = vcombine.low %v28_v25, %v28_v25 }
   0xa   :  { %285 = vmatprep.mubr.bf16.mxu0 %v566_v24  ;;  %v725_v31 = vld [vmem:[%s954_s3] sm:$0xff]   ;;  %v726_v34 = vld [vmem:[%s954_s3 + $0x8] sm:$0xff]   ;;  %v727_v35 = vld [vmem:[%s954_s3 + $0x10] sm:$0xff]  }
   0xb   :  { %298 = vmatpush1.bf16.msra.mxu1 %v703_v8  ;;  %594 = vmatprep.mubr.msk.bf16.mxu1 %vm249_vm0, %v568_v26  ;;  %v728_v36 = vld [vmem:[%s954_s3 + $0x18] sm:$0xff]   ;;  %v729_v37 = vld [vmem:[%s954_s3 + $0x20] sm:$0xff]   ;;  %v730_v38 = vld [vmem:[%s954_s3 + $0x28] sm:$0xff]  }
   0xc   :  { %618 = vmatpush3.bf16.msra.mxu0 %v704_v9  ;;  %299 = vmatprep.subr.bf16.mxu1 %v741_v0  ;;  %v731_v39 = vld [vmem:[%s954_s3 + $0x30] sm:$0xff]   ;;  %v732_v40 = vld [vmem:[%s954_s3 + $0x38] sm:$0xff]   ;;  %v733_v41 = vld [vmem:[%s955_s5] sm:$0xff]  }
   0xd   :  { %619 = vmatprep.subr.bf16.mxu0 %v705_v10  ;;  %v734_v42 = vld [vmem:[%s955_s5 + $0x8] sm:$0xff]   ;;  %v735_v43 = vld [vmem:[%s955_s5 + $0x10] sm:$0xff]   ;;  %v736_v44 = vld [vmem:[%s955_s5 + $0x18] sm:$0xff]  }
   0xe   :  { %v737_v45 = vld [vmem:[%s955_s5 + $0x20] sm:$0xff]   ;;  %v738_v46 = vld [vmem:[%s955_s5 + $0x28] sm:$0xff]   ;;  %v739_v61 = vld [vmem:[%s955_s5 + $0x30] sm:$0xff]  }
   0xf   :  { %300 = vmatpush1.bf16.msra.mxu1 %v706_v11  ;;  %v564_v49 = vld [vmem:[%s956_s2] ss:$0 sm:$0xff]  ;;  %v740_v62 = vld [vmem:[%s955_s5 + $0x38] sm:$0xff]  }
  0x10   :  { %620 = vmatpush3.bf16.msra.mxu0 %v707_v12  ;;  %301 = vmatprep.subr.bf16.mxu1 %v741_v0  ;;  %v595_v63 = vld [vmem:[%s957_s4] ss:$0 sm:$0xff] }
  0x11   :  { %621 = vmatprep.subr.bf16.mxu0 %v708_v13  ;;  %v604_v7 = vld [vmem:[%s958_s6] ss:$0 sm:$0xff] }
  0x13   :  { %302 = vmatpush1.bf16.msra.mxu1 %v709_v14 }
  0x14   :  { %622 = vmatpush3.bf16.msra.mxu0 %v710_v15  ;;  %303 = vmatprep.subr.bf16.mxu1 %v741_v0 }
  0x15   :  { %623 = vmatprep.subr.bf16.mxu0 %v711_v16 }
  0x17   :  { %304 = vmatpush1.bf16.msra.mxu1 %v712_v17 }
  0x18   :  { %624 = vmatpush3.bf16.msra.mxu0 %v713_v18  ;;  %305 = vmatprep.subr.bf16.mxu1 %v741_v0 }
  0x19   :  { %625 = vmatprep.subr.bf16.mxu0 %v714_v19 }
  0x1b   :  { %306 = vmatpush1.bf16.msra.mxu1 %v715_v20 }
  0x1c   :  { %626 = vmatpush3.bf16.msra.mxu0 %v716_v21  ;;  %307 = vmatprep.subr.bf16.mxu1 %v741_v0 }
  0x1d   :  { %627 = vmatprep.subr.bf16.mxu0 %v717_v23 }
  0x1f   :  { %308 = vmatpush1.bf16.msra.mxu1 %v718_v27 }
  0x20   :  { %628 = vmatpush3.bf16.msra.mxu0 %v719_v28  ;;  %309 = vmatprep.subr.bf16.mxu1 %v741_v0 }
  0x21   :  { %653 = vmatprep.subr.bf16.mxu0 %v742_v32 }
  0x23   :  { %286 = vmatmul.mubr.bf16.vlgmr.msra.gmra.mrb[0].mxu0 %v565_v30  ;;  %310 = vmatpush1.bf16.msra.mxu1 %v722_v29 }
  0x24   :  { %654 = vmatpush3.bf16.msra.mxu0 %v725_v31  ;;  %673 = vmatprep.subr.bf16.mxu1 %v742_v32 }
  0x25   :  { %655 = vmatprep.subr.bf16.mxu0 %v742_v32  ;;  %669 = vmatprep.mubr.msk.bf16.mxu0 %vm743_vm1, %v742_v32 }
  0x26   :  { %326 = vmatmul.mubr.bf16.vlgmr.msra.gmra.mrb[0].mxu1 %v567_v33 }
  0x27   :  { %689 = vmatprep.mubr.msk.bf16.mxu1 %vm743_vm1, %v742_v32  ;;  %674 = vmatpush3.bf16.msra.mxu1 %v733_v41 }
  0x28   :  { %656 = vmatpush3.bf16.msra.mxu0 %v726_v34  ;;  %675 = vmatprep.subr.bf16.mxu1 %v742_v32 }
  0x29   :  { %657 = vmatprep.subr.bf16.mxu0 %v742_v32 }
  0x2b   :  { %676 = vmatpush3.bf16.msra.mxu1 %v734_v42 }
  0x2c   :  { %658 = vmatpush3.bf16.msra.mxu0 %v727_v35  ;;  %677 = vmatprep.subr.bf16.mxu1 %v742_v32 }
  0x2d   :  { %659 = vmatprep.subr.bf16.mxu0 %v742_v32 }
  0x2f   :  { %678 = vmatpush3.bf16.msra.mxu1 %v735_v43 }
  0x30   :  { %660 = vmatpush3.bf16.msra.mxu0 %v728_v36  ;;  %679 = vmatprep.subr.bf16.mxu1 %v742_v32 }
  0x31   :  { %661 = vmatprep.subr.bf16.mxu0 %v742_v32 }
  0x33   :  { %680 = vmatpush3.bf16.msra.mxu1 %v736_v44 }
  0x34   :  { %662 = vmatpush3.bf16.msra.mxu0 %v729_v37  ;;  %681 = vmatprep.subr.bf16.mxu1 %v742_v32 }
  0x35   :  { %663 = vmatprep.subr.bf16.mxu0 %v742_v32 }
  0x37   :  { %682 = vmatpush3.bf16.msra.mxu1 %v737_v45 }
  0x38   :  { %664 = vmatpush3.bf16.msra.mxu0 %v730_v38  ;;  %683 = vmatprep.subr.bf16.mxu1 %v742_v32 }
  0x39   :  { %665 = vmatprep.subr.bf16.mxu0 %v742_v32 }
  0x3b   :  { %684 = vmatpush3.bf16.msra.mxu1 %v738_v46 }
  0x3c   :  { %666 = vmatpush3.bf16.msra.mxu0 %v731_v39  ;;  %685 = vmatprep.subr.bf16.mxu1 %v742_v32 }
  0x3d   :  { %667 = vmatprep.subr.bf16.mxu0 %v742_v32 }
  0x3f   :  { %686 = vmatpush3.bf16.msra.mxu1 %v739_v61 }
  0x40   :  { %668 = vmatpush3.bf16.msra.mxu0 %v732_v40  ;;  %687 = vmatprep.subr.bf16.mxu1 %v742_v32 }
  0x43   :  { %688 = vmatpush3.bf16.msra.mxu1 %v740_v62 }
  0xf6   :  { %v629_v47 = vpop.f32.mrb[0].mxu0 }
  0xf7   :  { %v630_v48 = vpop.f32.mrb[1].mxu0 }
  0xf8   :  { %v631_v50 = vadd.f32 %v630_v48, %v629_v47  ;;  %v632_v51 = vpop.f32.mrb[2].mxu0 }
  0xf9   :  { %v633_v52 = vpop.f32.mrb[3].mxu0  ;;  %v327_v53 = vpop.f32.mrb[0].mxu1 }
  0xfa   :  { %v288_v54 = vadd.f32 %v631_v50, %v564_v49  ;;  %v329_v55 = vpop.f32.mrb[1].mxu1 }
  0xfb   :  { %v330_v56 = vpop.f32.mrb[2].mxu1 }
  0xfc   :  { %v328_v57 = vadd.f32 %v327_v53, %v288_v54  ;;  %v331_v58 = vpop.f32.mrb[3].mxu1 }
  0xfe   :  { %v333_v59 = vmax.f32 %v328_v57, 0.0 }
 0x100   :  { %v334_v60 = vpack.c.bf16 %v333_v59, %v333_v59 }
 0x102   :  { %670 = vmatmul.mubr.bf16.vlgmr.msra.gmra.mrb[4].mxu0 %v334_v60 }
 0x1d5   :  { %v440_v0 = vpop.f32.mrb[4].mxu0 }
 0x1d6   :  { %v441_v1 = vadd.f32 %v595_v63, %v440_v0  ;;  %v671_v2 = vpop.f32.mrb[5].mxu0 }
 0x1d7   :  { %v443_v3 = vpop.f32.mrb[6].mxu0 }
 0x1d8   :  { %v446_v4 = vmax.f32 %v441_v1, 0.0  ;;  %v672_v5 = vpop.f32.mrb[7].mxu0 }
 0x1da   :  { %v447_v6 = vpack.c.bf16 %v446_v4, %v446_v4 }
 0x1dc   :  { %690 = vmatmul.mubr.bf16.vlgmr.msra.gmra.mrb[4].mxu1 %v447_v6 }
 0x2af   :  { %v553_v8 = vpop.f32.mrb[4].mxu1 }
 0x2b0   :  { %v554_v9 = vadd.f32 %v604_v7, %v553_v8  ;;  %v691_v10 = vpop.f32.mrb[5].mxu1 }
 0x2b1   :  { %v556_v11 = vpop.f32.mrb[6].mxu1 }
 0x2b2   :  { %559 = vst [vmem:[%s959_s7] sm:$0xff] %v554_v9  ;;  %v692_v12 = vpop.f32.mrb[7].mxu1 }

</bundles_post_ra>
